<compile_context>
chip_gen: v7x
topology: tpu7x:2x2x1
jax: 0.10.0
libtpu: 0.0.40
codegen_flags: <defaults>
</compile_context>

<pallas_src>
import functools

import jax
import jax.numpy as jnp
from jax.experimental import pallas as pl
from jax.experimental.pallas import tpu as pltpu


# ---------------------------------------------------------------------------
# Generic tiled matmul + bias kernel (used for the hoisted gi and FC matmuls).
# ---------------------------------------------------------------------------
def _matmul_bias_kernel(a_ref, b_ref, bias_ref, o_ref, acc_ref):
    k = pl.program_id(2)

    @pl.when(k == 0)
    def _():
        acc_ref[...] = jnp.zeros_like(acc_ref)

    acc_ref[...] += jnp.dot(a_ref[...], b_ref[...],
                            preferred_element_type=jnp.float32)

    @pl.when(k == pl.num_programs(2) - 1)
    def _():
        o_ref[...] = (acc_ref[...] + bias_ref[...].astype(jnp.float32)).astype(o_ref.dtype)


def _round_up(x, m):
    return ((x + m - 1) // m) * m


def _pick_tile(dim, target, quantum):
    """Largest tile <= target that is a multiple of `quantum` and divides `dim`,
    else the full dim (full-extent blocks are always legal)."""
    if dim <= target:
        return dim
    t = (target // quantum) * quantum
    while t >= quantum:
        if dim % t == 0:
            return t
        t -= quantum
    return dim


def _pick_chunk(T, target):
    """Largest divisor of T that is <= target (timesteps per grid step)."""
    for c in range(min(T, target), 0, -1):
        if T % c == 0:
            return c
    return 1


def _matmul_bias(a, b, bias, *, out_dtype=jnp.float32, tm=256, tn=512, tk=512):
    """out = a @ b + bias, tiled over (M, N, K) with parallel M/N axes."""
    M, K = a.shape
    K2, N = b.shape
    assert K == K2 and bias.shape == (1, N)
    btm = _pick_tile(M, tm, 8)
    btn = _pick_tile(N, tn, 128)
    btk = _pick_tile(K, tk, 128)
    grid = (M // btm, N // btn, K // btk)
    return pl.pallas_call(
        _matmul_bias_kernel,
        out_shape=jax.ShapeDtypeStruct((M, N), out_dtype),
        grid_spec=pltpu.PrefetchScalarGridSpec(
            num_scalar_prefetch=0,
            grid=grid,
            in_specs=[
                pl.BlockSpec((btm, btk), lambda i, j, k: (i, k)),
                pl.BlockSpec((btk, btn), lambda i, j, k: (k, j)),
                pl.BlockSpec((1, btn), lambda i, j, k: (0, j)),
            ],
            out_specs=pl.BlockSpec((btm, btn), lambda i, j, k: (i, j)),
            scratch_shapes=[pltpu.VMEM((btm, btn), jnp.float32)],
        ),
        compiler_params=pltpu.CompilerParams(
            # Parallel M/N axes: megacore-shardable on v7x; K is the reduction.
            dimension_semantics=("parallel", "parallel", "arbitrary"),
        ),
    )(a, b, bias)


# ---------------------------------------------------------------------------
# Sequential GRU recurrence kernel (only the time-dependent work).
# ---------------------------------------------------------------------------
def _gru_seq_kernel(gi_ref, whh_ref, bhh_ref, h0_ref, hs_ref, hout_ref, h_scr):
    c = pl.program_id(0)

    @pl.when(c == 0)
    def _():
        h_scr[...] = h0_ref[...].astype(jnp.float32)

    Hp = h_scr.shape[-1]
    TT = gi_ref.shape[0]
    whh = whh_ref[...]                               # (Hp, 3Hp), resident in VMEM
    bhh = bhh_ref[...].astype(jnp.float32)           # (1, 3Hp)

    def step(i, h):
        gi = gi_ref[i].astype(jnp.float32)           # (B, 3Hp) precomputed x@W_ih^T+b_ih
        gh = jnp.dot(h.astype(whh.dtype), whh,
                     preferred_element_type=jnp.float32) + bhh
        # Gate slices are 128-lane aligned because H was padded to Hp (free views).
        r = jax.nn.sigmoid(gi[:, 0:Hp] + gh[:, 0:Hp])
        z = jax.nn.sigmoid(gi[:, Hp:2 * Hp] + gh[:, Hp:2 * Hp])
        n = jnp.tanh(gi[:, 2 * Hp:3 * Hp] + r * gh[:, 2 * Hp:3 * Hp])
        h_new = (1.0 - z) * n + z * h
        hs_ref[i] = h_new.astype(hs_ref.dtype)
        return h_new

    h_final = jax.lax.fori_loop(0, TT, step, h_scr[...], unroll=True)
    h_scr[...] = h_final

    @pl.when(c == pl.num_programs(0) - 1)
    def _():
        hout_ref[...] = h_final.astype(hout_ref.dtype)


# ---------------------------------------------------------------------------
# Full model forward: Embedding -> GRU -> Linear.
# ---------------------------------------------------------------------------
def gru_model_forward(x_ids, hidden, params, compute_dtype=jnp.float32):
    """x_ids: (B, T) int32; hidden: (1, B, H).  Returns (logits (B,T,V), hidden (1,B,H))."""
    emb = params["embedding"]            # (V, E)
    wih = params["w_ih"]                 # (3H, E)  PyTorch gate order [r; z; n]
    whh = params["w_hh"]                 # (3H, H)
    bih = params["b_ih"]                 # (3H,)
    bhh = params["b_hh"]                 # (3H,)
    wfc = params["w_fc"]                 # (V, H)
    bfc = params["b_fc"]                 # (V,)

    B, T = x_ids.shape
    V, E = emb.shape
    H = whh.shape[1]
    Hp = _round_up(H, 128)               # lane-aligned gates / hidden
    Vp = _round_up(V, 128)               # lane-dense logit stores

    # --- weight prep: split per gate, transpose, zero-pad H -> Hp ----------------
    def pad_gate_cols(w):                # w: (3H, K_in) -> (K_in, 3Hp)
        parts = []
        for g in range(3):
            wg = w[g * H:(g + 1) * H].T                      # (K_in, H)
            parts.append(jnp.pad(wg, ((0, 0), (0, Hp - H))))
        return jnp.concatenate(parts, axis=1)

    def pad_gate_bias(b):                # (3H,) -> (1, 3Hp)
        return jnp.concatenate(
            [jnp.pad(b[g * H:(g + 1) * H], (0, Hp - H)) for g in range(3)]
        ).reshape(1, -1)

    wih_p = pad_gate_cols(wih).astype(compute_dtype)                          # (E, 3Hp)
    whh_p = jnp.pad(pad_gate_cols(whh), ((0, Hp - H), (0, 0))).astype(compute_dtype)  # (Hp, 3Hp)
    bih_p = pad_gate_bias(bih).astype(jnp.float32)                            # (1, 3Hp)
    bhh_p = pad_gate_bias(bhh).astype(jnp.float32)                            # (1, 3Hp)
    wfc_p = jnp.pad(wfc.T, ((0, Hp - H), (0, Vp - V))).astype(compute_dtype)  # (Hp, Vp)
    bfc_p = jnp.pad(bfc, (0, Vp - V)).reshape(1, -1).astype(jnp.float32)      # (1, Vp)
    h0_p = jnp.pad(hidden[0], ((0, 0), (0, Hp - H))).astype(jnp.float32)      # (B, Hp)
    # (Padded lanes stay exactly zero through the recurrence: padded weight rows/cols
    #  and biases are zero, so i_n = h_n = 0 -> n = 0 and h_pad stays 0.)

    # --- 1) embedding gather, directly time-major ------------------------------
    # TODO(synk): data-dependent gather stays in XLA (jnp.take); a manual-DMA Pallas
    # gather is not worthwhile at these sizes.
    x_tm = jnp.take(emb, x_ids.T, axis=0).astype(compute_dtype)               # (T, B, E)

    # --- 2) hoisted input-gate matmul over all T*B rows at once ----------------
    gi_flat = _matmul_bias(x_tm.reshape(T * B, E), wih_p, bih_p,
                           out_dtype=jnp.float32)                             # (T*B, 3Hp)
    gi_tm = gi_flat.reshape(T, B, 3 * Hp)

    # --- 3) sequential GRU recurrence, chunked over time -----------------------
    TT = _pick_chunk(T, 16)
    hs_tm, h_out = pl.pallas_call(
        _gru_seq_kernel,
        out_shape=(
            jax.ShapeDtypeStruct((T, B, Hp), jnp.float32),
            jax.ShapeDtypeStruct((B, Hp), jnp.float32),
        ),
        grid_spec=pltpu.PrefetchScalarGridSpec(
            num_scalar_prefetch=0,
            grid=(T // TT,),
            in_specs=[
                pl.BlockSpec((TT, B, 3 * Hp), lambda c: (c, 0, 0)),   # gi chunk
                pl.BlockSpec((Hp, 3 * Hp), lambda c: (0, 0)),          # W_hh^T (resident)
                pl.BlockSpec((1, 3 * Hp), lambda c: (0, 0)),           # b_hh
                pl.BlockSpec((B, Hp), lambda c: (0, 0)),               # h0
            ],
            out_specs=[
                pl.BlockSpec((TT, B, Hp), lambda c: (c, 0, 0)),        # h_t chunk
                pl.BlockSpec((B, Hp), lambda c: (0, 0)),               # final hidden
            ],
            scratch_shapes=[pltpu.VMEM((B, Hp), jnp.float32)],
        ),
        compiler_params=pltpu.CompilerParams(
            dimension_semantics=("arbitrary",),                        # true recurrence
        ),
    )(gi_tm, whh_p, bhh_p, h0_p)

    # --- 4) hoisted output projection over all (b, t) rows at once -------------
    # Small (T,B,Hp)->(B,T,Hp) transpose here (cheaper than transposing logits).
    hs_bf = jnp.transpose(hs_tm, (1, 0, 2)).reshape(B * T, Hp).astype(compute_dtype)
    logits_p = _matmul_bias(hs_bf, wfc_p, bfc_p, out_dtype=jnp.float32)        # (B*T, Vp)
    logits = logits_p.reshape(B, T, Vp)[:, :, :V]                              # drop vocab pad

    return logits, h_out[:, :H][None]                                          # (1, B, H)


# ---------------------------------------------------------------------------
# Pure-JAX reference matching torch.nn.GRU / nn.Linear semantics.
# ---------------------------------------------------------------------------
def _reference_forward(x_ids, hidden, params):
    emb, wih, whh = params["embedding"], params["w_ih"], params["w_hh"]
    bih, bhh, wfc, bfc = params["b_ih"], params["b_hh"], params["w_fc"], params["b_fc"]
    H = whh.shape[1]
    x = jnp.take(emb, x_ids, axis=0)              # (B, T, E)
    h = hidden[0]

    def step(h, x_t):
        gi = x_t @ wih.T + bih
        gh = h @ whh.T + bhh
        i_r, i_z, i_n = gi[:, :H], gi[:, H:2 * H], gi[:, 2 * H:]
        h_r, h_z, h_n = gh[:, :H], gh[:, H:2 * H], gh[:, 2 * H:]
        r = jax.nn.sigmoid(i_r + h_r)
        z = jax.nn.sigmoid(i_z + h_z)
        n = jnp.tanh(i_n + r * h_n)
        h_new = (1.0 - z) * n + z * h
        return h_new, h_new

    h_last, hs = jax.lax.scan(step, h, jnp.transpose(x, (1, 0, 2)))
    y = jnp.transpose(hs, (1, 0, 2)) @ wfc.T + bfc
    return y, h_last[None]


if __name__ == "__main__":
    # Small shapes consistent with the module (scaled-down vocab/embedding/rnn_units).
    B, T = 2, 8
    vocab_size, embedding_dim, rnn_units = 32, 32, 64

    key = jax.random.PRNGKey(0)
    keys = jax.random.split(key, 9)

    params = {
        "embedding": jax.random.normal(keys[0], (vocab_size, embedding_dim), jnp.float32) * 0.1,
        "w_ih": jax.random.normal(keys[1], (3 * rnn_units, embedding_dim), jnp.float32) * 0.1,
        "w_hh": jax.random.normal(keys[2], (3 * rnn_units, rnn_units), jnp.float32) * 0.1,
        "b_ih": jax.random.normal(keys[3], (3 * rnn_units,), jnp.float32) * 0.1,
        "b_hh": jax.random.normal(keys[4], (3 * rnn_units,), jnp.float32) * 0.1,
        "w_fc": jax.random.normal(keys[5], (vocab_size, rnn_units), jnp.float32) * 0.1,
        "b_fc": jax.random.normal(keys[6], (vocab_size,), jnp.float32) * 0.1,
    }

    x_ids = jax.random.randint(keys[7], (B, T), 0, vocab_size, dtype=jnp.int32)
    hidden0 = jax.random.normal(keys[8], (1, B, rnn_units), jnp.float32) * 0.1

    fwd = jax.jit(gru_model_forward, static_argnames=("compute_dtype",))
    ref_logits, ref_hidden = _reference_forward(x_ids, hidden0, params)

    # fp32 path: tight tolerance against the pure-JAX reference.
    logits, hidden = fwd(x_ids, hidden0, params, compute_dtype=jnp.float32)
    jax.block_until_ready((logits, hidden))
    assert logits.shape == (B, T, vocab_size)
    assert hidden.shape == (1, B, rnn_units)
    assert jnp.allclose(logits, ref_logits, atol=2e-4, rtol=2e-4)
    assert jnp.allclose(hidden, ref_hidden, atol=2e-4, rtol=2e-4)

    # bf16 matmul path (fp32 accumulation / fp32 hidden carry): loose tolerance.
    logits_bf, hidden_bf = fwd(x_ids, hidden0, params, compute_dtype=jnp.bfloat16)
    jax.block_until_ready((logits_bf, hidden_bf))
    assert jnp.allclose(logits_bf, ref_logits, atol=3e-2, rtol=3e-2)
    assert jnp.allclose(hidden_bf, ref_hidden, atol=3e-2, rtol=3e-2)

    print("KERNEL_OK")
</pallas_src>

<mosaic_0001>
module attributes {stable_mosaic.version = 11 : i64} {
  func.func @_matmul_bias_kernel(%arg0: i32, %arg1: i32, %arg2: i32, %arg3: memref<16x32xf32, #tpu.memory_space<vmem>>, %arg4: memref<32x384xf32, #tpu.memory_space<vmem>>, %arg5: memref<1x384xf32, #tpu.memory_space<vmem>>, %arg6: memref<16x384xf32, #tpu.memory_space<vmem>>, %arg7: memref<16x384xf32, #tpu.memory_space<vmem>>) attributes {dimension_semantics = [#tpu.dimension_semantics<parallel>, #tpu.dimension_semantics<parallel>, #tpu.dimension_semantics<arbitrary>], iteration_bounds = array<i64: 1, 1, 1>, scalar_prefetch = 0 : i64, scratch_operands = 1 : i64, tpu.core_type = #tpu.core_type<tc>, window_params = [{transform_indices = @transform_0, window_bounds = array<i64: 16, 32>}, {transform_indices = @transform_1, window_bounds = array<i64: 32, 384>}, {transform_indices = @transform_2, window_bounds = array<i64: 1, 384>}, {transform_indices = @transform_3, window_bounds = array<i64: 16, 384>}]} {
    %c0_i32 = arith.constant 0 : i32
    %0 = arith.cmpi eq, %arg2, %c0_i32 : i32
    %1 = arith.extui %0 : i1 to i32
    %c0_i32_0 = arith.constant 0 : i32
    %2 = arith.cmpi ne, %1, %c0_i32_0 : i32
    scf.if %2 {
      %cst_10 = arith.constant 0.000000e+00 : f32
      %12 = vector.broadcast %cst_10 : f32 to vector<16x384xf32>
      %c0_11 = arith.constant 0 : index
      %c0_12 = arith.constant 0 : index
      %13 = vector.load %arg7[%c0_11, %c0_12] : memref<16x384xf32, #tpu.memory_space<vmem>>, vector<16x384xf32>
      tpu.vector_store %arg7[%c0_11, %c0_12], %12 {strides = array<i32>} : memref<16x384xf32, #tpu.memory_space<vmem>>, vector<16x384xf32>,
    } else {
    }
    %c0 = arith.constant 0 : index
    %c0_1 = arith.constant 0 : index
    %3 = vector.load %arg7[%c0, %c0_1] : memref<16x384xf32, #tpu.memory_space<vmem>>, vector<16x384xf32>
    %c0_2 = arith.constant 0 : index
    %c0_3 = arith.constant 0 : index
    %4 = vector.load %arg3[%c0_2, %c0_3] : memref<16x32xf32, #tpu.memory_space<vmem>>, vector<16x32xf32>
    %c0_4 = arith.constant 0 : index
    %c0_5 = arith.constant 0 : index
    %5 = vector.load %arg4[%c0_4, %c0_5] : memref<32x384xf32, #tpu.memory_space<vmem>>, vector<32x384xf32>
    %cst = arith.constant dense<0.000000e+00> : vector<16x384xf32>
    %6 = tpu.matmul %4, %5, %cst {dimension_numbers = #tpu.dot_dimension_numbers<[1], [0], [0], [1], [0, 0, 1, 1], [], []>} : vector<16x32xf32>, vector<32x384xf32>, vector<16x384xf32> -> vector<16x384xf32>
    %7 = arith.addf %3, %6 : vector<16x384xf32>
    %c0_6 = arith.constant 0 : index
    %c0_7 = arith.constant 0 : index
    %8 = vector.load %arg7[%c0_6, %c0_7] : memref<16x384xf32, #tpu.memory_space<vmem>>, vector<16x384xf32>
    tpu.vector_store %arg7[%c0_6, %c0_7], %7 {strides = array<i32>} : memref<16x384xf32, #tpu.memory_space<vmem>>, vector<16x384xf32>,
    %c0_i32_8 = arith.constant 0 : i32
    %9 = arith.cmpi eq, %arg2, %c0_i32_8 : i32
    %10 = arith.extui %9 : i1 to i32
    %c0_i32_9 = arith.constant 0 : i32
    %11 = arith.cmpi ne, %10, %c0_i32_9 : i32
    scf.if %11 {
      %c0_10 = arith.constant 0 : index
      %c0_11 = arith.constant 0 : index
      %12 = vector.load %arg7[%c0_10, %c0_11] : memref<16x384xf32, #tpu.memory_space<vmem>>, vector<16x384xf32>
      %c0_12 = arith.constant 0 : index
      %c0_13 = arith.constant 0 : index
      %13 = vector.load %arg5[%c0_12, %c0_13] : memref<1x384xf32, #tpu.memory_space<vmem>>, vector<1x384xf32>
      %14 = vector.broadcast %13 : vector<1x384xf32> to vector<16x384xf32>
      %15 = arith.addf %12, %14 : vector<16x384xf32>
      %c0_14 = arith.constant 0 : index
      %c0_15 = arith.constant 0 : index
      %16 = vector.load %arg6[%c0_14, %c0_15] : memref<16x384xf32, #tpu.memory_space<vmem>>, vector<16x384xf32>
      tpu.vector_store %arg6[%c0_14, %c0_15], %15 {strides = array<i32>} : memref<16x384xf32, #tpu.memory_space<vmem>>, vector<16x384xf32>,
    } else {
    }
    return
  }
  func.func @transform_0(%arg0: i32, %arg1: i32, %arg2: i32) -> (i32, i32) {
    %c0_i32 = arith.constant 0 : i32
    return %arg0, %arg2 : i32, i32
  }
  func.func @transform_1(%arg0: i32, %arg1: i32, %arg2: i32) -> (i32, i32) {
    %c0_i32 = arith.constant 0 : i32
    return %arg2, %arg1 : i32, i32
  }
  func.func @transform_2(%arg0: i32, %arg1: i32, %arg2: i32) -> (i32, i32) {
    %c0_i32 = arith.constant 0 : i32
    %c0_i32_0 = arith.constant 0 : i32
    return %c0_i32, %arg1 : i32, i32
  }
  func.func @transform_3(%arg0: i32, %arg1: i32, %arg2: i32) -> (i32, i32) {
    %c0_i32 = arith.constant 0 : i32
    return %arg0, %arg1 : i32, i32
  }
}

module attributes {stable_mosaic.version = 11 : i64} {
  func.func @_gru_seq_kernel(%arg0: i32, %arg1: memref<8x2x384xf32, #tpu.memory_space<vmem>>, %arg2: memref<128x384xf32, #tpu.memory_space<vmem>>, %arg3: memref<1x384xf32, #tpu.memory_space<vmem>>, %arg4: memref<2x128xf32, #tpu.memory_space<vmem>>, %arg5: memref<8x2x128xf32, #tpu.memory_space<vmem>>, %arg6: memref<2x128xf32, #tpu.memory_space<vmem>>, %arg7: memref<2x128xf32, #tpu.memory_space<vmem>>) attributes {dimension_semantics = [#tpu.dimension_semantics<arbitrary>], iteration_bounds = array<i64: 1>, scalar_prefetch = 0 : i64, scratch_operands = 1 : i64, tpu.core_type = #tpu.core_type<tc>, window_params = [{transform_indices = @transform_0, window_bounds = array<i64: 8, 2, 384>}, {pipeline_mode = #tpu.pipeline_mode<synchronous>, transform_indices = @transform_1, window_bounds = array<i64: 128, 384>}, {pipeline_mode = #tpu.pipeline_mode<synchronous>, transform_indices = @transform_2, window_bounds = array<i64: 1, 384>}, {pipeline_mode = #tpu.pipeline_mode<synchronous>, transform_indices = @transform_3, window_bounds = array<i64: 2, 128>}, {transform_indices = @transform_4, window_bounds = array<i64: 8, 2, 128>}, {pipeline_mode = #tpu.pipeline_mode<synchronous>, transform_indices = @transform_5, window_bounds = array<i64: 2, 128>}]} {
    %c0_i32 = arith.constant 0 : i32
    %0 = arith.cmpi eq, %arg0, %c0_i32 : i32
    %1 = arith.extui %0 : i1 to i32
    %c0_i32_0 = arith.constant 0 : i32
    %2 = arith.cmpi ne, %1, %c0_i32_0 : i32
    scf.if %2 {
      %c0_74 = arith.constant 0 : index
      %c0_75 = arith.constant 0 : index
      %298 = vector.load %arg4[%c0_74, %c0_75] : memref<2x128xf32, #tpu.memory_space<vmem>>, vector<2x128xf32>
      %c0_76 = arith.constant 0 : index
      %c0_77 = arith.constant 0 : index
      %299 = vector.load %arg7[%c0_76, %c0_77] : memref<2x128xf32, #tpu.memory_space<vmem>>, vector<2x128xf32>
      tpu.vector_store %arg7[%c0_76, %c0_77], %298 {strides = array<i32>} : memref<2x128xf32, #tpu.memory_space<vmem>>, vector<2x128xf32>,
    } else {
    }
    %c0 = arith.constant 0 : index
    %c0_1 = arith.constant 0 : index
    %3 = vector.load %arg2[%c0, %c0_1] : memref<128x384xf32, #tpu.memory_space<vmem>>, vector<128x384xf32>
    %c0_2 = arith.constant 0 : index
    %c0_3 = arith.constant 0 : index
    %4 = vector.load %arg3[%c0_2, %c0_3] : memref<1x384xf32, #tpu.memory_space<vmem>>, vector<1x384xf32>
    %c0_4 = arith.constant 0 : index
    %c0_5 = arith.constant 0 : index
    %5 = vector.load %arg7[%c0_4, %c0_5] : memref<2x128xf32, #tpu.memory_space<vmem>>, vector<2x128xf32>
    %c0_i32_6 = arith.constant 0 : i32
    %6 = arith.index_cast %c0_i32_6 : i32 to index
    %c0_7 = arith.constant 0 : index
    %c0_8 = arith.constant 0 : index
    %7 = vector.load %arg1[%6, %c0_7, %c0_8] : memref<8x2x384xf32, #tpu.memory_space<vmem>>, vector<1x2x384xf32>
    %8 = vector.shape_cast %7 : vector<1x2x384xf32> to vector<2x384xf32>
    %cst = arith.constant dense<0.000000e+00> : vector<2x384xf32>
    %9 = tpu.matmul %5, %3, %cst {dimension_numbers = #tpu.dot_dimension_numbers<[1], [0], [0], [1], [0, 0, 1, 1], [], []>} : vector<2x128xf32>, vector<128x384xf32>, vector<2x384xf32> -> vector<2x384xf32>
    %10 = vector.broadcast %4 : vector<1x384xf32> to vector<2x384xf32>
    %11 = arith.addf %9, %10 : vector<2x384xf32>
    %12 = vector.extract_strided_slice %8 {offsets = [0, 0], sizes = [2, 128], strides = [1, 1]} : vector<2x384xf32> to vector<2x128xf32>
    %13 = vector.extract_strided_slice %11 {offsets = [0, 0], sizes = [2, 128], strides = [1, 1]} : vector<2x384xf32> to vector<2x128xf32>
    %14 = arith.addf %12, %13 : vector<2x128xf32>
    %15 = arith.negf %14 : vector<2x128xf32>
    %16 = math.exp %15 : vector<2x128xf32>
    %cst_9 = arith.constant 1.000000e+00 : f32
    %17 = vector.broadcast %cst_9 : f32 to vector<2x128xf32>
    %18 = arith.addf %17, %16 : vector<2x128xf32>
    %19 = arith.divf %17, %18 : vector<2x128xf32>
    %20 = vector.extract_strided_slice %8 {offsets = [0, 128], sizes = [2, 128], strides = [1, 1]} : vector<2x384xf32> to vector<2x128xf32>
    %21 = vector.extract_strided_slice %11 {offsets = [0, 128], sizes = [2, 128], strides = [1, 1]} : vector<2x384xf32> to vector<2x128xf32>
    %22 = arith.addf %20, %21 : vector<2x128xf32>
    %23 = arith.negf %22 : vector<2x128xf32>
    %24 = math.exp %23 : vector<2x128xf32>
    %cst_10 = arith.constant 1.000000e+00 : f32
    %25 = vector.broadcast %cst_10 : f32 to vector<2x128xf32>
    %26 = arith.addf %25, %24 : vector<2x128xf32>
    %27 = arith.divf %25, %26 : vector<2x128xf32>
    %28 = vector.extract_strided_slice %8 {offsets = [0, 256], sizes = [2, 128], strides = [1, 1]} : vector<2x384xf32> to vector<2x128xf32>
    %29 = vector.extract_strided_slice %11 {offsets = [0, 256], sizes = [2, 128], strides = [1, 1]} : vector<2x384xf32> to vector<2x128xf32>
    %30 = arith.mulf %19, %29 : vector<2x128xf32>
    %31 = arith.addf %28, %30 : vector<2x128xf32>
    %32 = math.tanh %31 : vector<2x128xf32>
    %cst_11 = arith.constant 1.000000e+00 : f32
    %33 = vector.broadcast %cst_11 : f32 to vector<2x128xf32>
    %34 = arith.subf %33, %27 : vector<2x128xf32>
    %35 = arith.mulf %34, %32 : vector<2x128xf32>
    %36 = arith.mulf %27, %5 : vector<2x128xf32>
    %37 = arith.addf %35, %36 : vector<2x128xf32>
    %38 = arith.index_cast %c0_i32_6 : i32 to index
    %c0_12 = arith.constant 0 : index
    %c0_13 = arith.constant 0 : index
    %39 = vector.load %arg5[%38, %c0_12, %c0_13] : memref<8x2x128xf32, #tpu.memory_space<vmem>>, vector<1x2x128xf32>
    %40 = vector.shape_cast %39 : vector<1x2x128xf32> to vector<2x128xf32>
    %41 = vector.shape_cast %37 : vector<2x128xf32> to vector<1x2x128xf32>
    tpu.vector_store %arg5[%38, %c0_12, %c0_13], %41 {strides = array<i32>} : memref<8x2x128xf32, #tpu.memory_space<vmem>>, vector<1x2x128xf32>,
    %c1_i32 = arith.constant 1 : i32
    %42 = arith.index_cast %c1_i32 : i32 to index
    %c0_14 = arith.constant 0 : index
    %c0_15 = arith.constant 0 : index
    %43 = vector.load %arg1[%42, %c0_14, %c0_15] : memref<8x2x384xf32, #tpu.memory_space<vmem>>, vector<1x2x384xf32>
    %44 = vector.shape_cast %43 : vector<1x2x384xf32> to vector<2x384xf32>
    %cst_16 = arith.constant dense<0.000000e+00> : vector<2x384xf32>
    %45 = tpu.matmul %37, %3, %cst_16 {dimension_numbers = #tpu.dot_dimension_numbers<[1], [0], [0], [1], [0, 0, 1, 1], [], []>} : vector<2x128xf32>, vector<128x384xf32>, vector<2x384xf32> -> vector<2x384xf32>
    %46 = vector.broadcast %4 : vector<1x384xf32> to vector<2x384xf32>
    %47 = arith.addf %45, %46 : vector<2x384xf32>
    %48 = vector.extract_strided_slice %44 {offsets = [0, 0], sizes = [2, 128], strides = [1, 1]} : vector<2x384xf32> to vector<2x128xf32>
    %49 = vector.extract_strided_slice %47 {offsets = [0, 0], sizes = [2, 128], strides = [1, 1]} : vector<2x384xf32> to vector<2x128xf32>
    %50 = arith.addf %48, %49 : vector<2x128xf32>
    %51 = arith.negf %50 : vector<2x128xf32>
    %52 = math.exp %51 : vector<2x128xf32>
    %cst_17 = arith.constant 1.000000e+00 : f32
    %53 = vector.broadcast %cst_17 : f32 to vector<2x128xf32>
    %54 = arith.addf %53, %52 : vector<2x128xf32>
    %55 = arith.divf %53, %54 : vector<2x128xf32>
    %56 = vector.extract_strided_slice %44 {offsets = [0, 128], sizes = [2, 128], strides = [1, 1]} : vector<2x384xf32> to vector<2x128xf32>
    %57 = vector.extract_strided_slice %47 {offsets = [0, 128], sizes = [2, 128], strides = [1, 1]} : vector<2x384xf32> to vector<2x128xf32>
    %58 = arith.addf %56, %57 : vector<2x128xf32>
    %59 = arith.negf %58 : vector<2x128xf32>
    %60 = math.exp %59 : vector<2x128xf32>
    %cst_18 = arith.constant 1.000000e+00 : f32
    %61 = vector.broadcast %cst_18 : f32 to vector<2x128xf32>
    %62 = arith.addf %61, %60 : vector<2x128xf32>
    %63 = arith.divf %61, %62 : vector<2x128xf32>
    %64 = vector.extract_strided_slice %44 {offsets = [0, 256], sizes = [2, 128], strides = [1, 1]} : vector<2x384xf32> to vector<2x128xf32>
    %65 = vector.extract_strided_slice %47 {offsets = [0, 256], sizes = [2, 128], strides = [1, 1]} : vector<2x384xf32> to vector<2x128xf32>
    %66 = arith.mulf %55, %65 : vector<2x128xf32>
    %67 = arith.addf %64, %66 : vector<2x128xf32>
    %68 = math.tanh %67 : vector<2x128xf32>
    %cst_19 = arith.constant 1.000000e+00 : f32
    %69 = vector.broadcast %cst_19 : f32 to vector<2x128xf32>
    %70 = arith.subf %69, %63 : vector<2x128xf32>
    %71 = arith.mulf %70, %68 : vector<2x128xf32>
    %72 = arith.mulf %63, %37 : vector<2x128xf32>
    %73 = arith.addf %71, %72 : vector<2x128xf32>
    %74 = arith.index_cast %c1_i32 : i32 to index
    %c0_20 = arith.constant 0 : index
    %c0_21 = arith.constant 0 : index
    %75 = vector.load %arg5[%74, %c0_20, %c0_21] : memref<8x2x128xf32, #tpu.memory_space<vmem>>, vector<1x2x128xf32>
    %76 = vector.shape_cast %75 : vector<1x2x128xf32> to vector<2x128xf32>
    %77 = vector.shape_cast %73 : vector<2x128xf32> to vector<1x2x128xf32>
    tpu.vector_store %arg5[%74, %c0_20, %c0_21], %77 {strides = array<i32>} : memref<8x2x128xf32, #tpu.memory_space<vmem>>, vector<1x2x128xf32>,
    %c2_i32 = arith.constant 2 : i32
    %78 = arith.index_cast %c2_i32 : i32 to index
    %c0_22 = arith.constant 0 : index
    %c0_23 = arith.constant 0 : index
    %79 = vector.load %arg1[%78, %c0_22, %c0_23] : memref<8x2x384xf32, #tpu.memory_space<vmem>>, vector<1x2x384xf32>
    %80 = vector.shape_cast %79 : vector<1x2x384xf32> to vector<2x384xf32>
    %cst_24 = arith.constant dense<0.000000e+00> : vector<2x384xf32>
    %81 = tpu.matmul %73, %3, %cst_24 {dimension_numbers = #tpu.dot_dimension_numbers<[1], [0], [0], [1], [0, 0, 1, 1], [], []>} : vector<2x128xf32>, vector<128x384xf32>, vector<2x384xf32> -> vector<2x384xf32>
    %82 = vector.broadcast %4 : vector<1x384xf32> to vector<2x384xf32>
    %83 = arith.addf %81, %82 : vector<2x384xf32>
    %84 = vector.extract_strided_slice %80 {offsets = [0, 0], sizes = [2, 128], strides = [1, 1]} : vector<2x384xf32> to vector<2x128xf32>
    %85 = vector.extract_strided_slice %83 {offsets = [0, 0], sizes = [2, 128], strides = [1, 1]} : vector<2x384xf32> to vector<2x128xf32>
    %86 = arith.addf %84, %85 : vector<2x128xf32>
    %87 = arith.negf %86 : vector<2x128xf32>
    %88 = math.exp %87 : vector<2x128xf32>
    %cst_25 = arith.constant 1.000000e+00 : f32
    %89 = vector.broadcast %cst_25 : f32 to vector<2x128xf32>
    %90 = arith.addf %89, %88 : vector<2x128xf32>
    %91 = arith.divf %89, %90 : vector<2x128xf32>
    %92 = vector.extract_strided_slice %80 {offsets = [0, 128], sizes = [2, 128], strides = [1, 1]} : vector<2x384xf32> to vector<2x128xf32>
    %93 = vector.extract_strided_slice %83 {offsets = [0, 128], sizes = [2, 128], strides = [1, 1]} : vector<2x384xf32> to vector<2x128xf32>
    %94 = arith.addf %92, %93 : vector<2x128xf32>
    %95 = arith.negf %94 : vector<2x128xf32>
    %96 = math.exp %95 : vector<2x128xf32>
    %cst_26 = arith.constant 1.000000e+00 : f32
    %97 = vector.broadcast %cst_26 : f32 to vector<2x128xf32>
    %98 = arith.addf %97, %96 : vector<2x128xf32>
    %99 = arith.divf %97, %98 : vector<2x128xf32>
    %100 = vector.extract_strided_slice %80 {offsets = [0, 256], sizes = [2, 128], strides = [1, 1]} : vector<2x384xf32> to vector<2x128xf32>
    %101 = vector.extract_strided_slice %83 {offsets = [0, 256], sizes = [2, 128], strides = [1, 1]} : vector<2x384xf32> to vector<2x128xf32>
    %102 = arith.mulf %91, %101 : vector<2x128xf32>
    %103 = arith.addf %100, %102 : vector<2x128xf32>
    %104 = math.tanh %103 : vector<2x128xf32>
    %cst_27 = arith.constant 1.000000e+00 : f32
    %105 = vector.broadcast %cst_27 : f32 to vector<2x128xf32>
    %106 = arith.subf %105, %99 : vector<2x128xf32>
    %107 = arith.mulf %106, %104 : vector<2x128xf32>
    %108 = arith.mulf %99, %73 : vector<2x128xf32>
    %109 = arith.addf %107, %108 : vector<2x128xf32>
    %110 = arith.index_cast %c2_i32 : i32 to index
    %c0_28 = arith.constant 0 : index
    %c0_29 = arith.constant 0 : index
    %111 = vector.load %arg5[%110, %c0_28, %c0_29] : memref<8x2x128xf32, #tpu.memory_space<vmem>>, vector<1x2x128xf32>
    %112 = vector.shape_cast %111 : vector<1x2x128xf32> to vector<2x128xf32>
    %113 = vector.shape_cast %109 : vector<2x128xf32> to vector<1x2x128xf32>
    tpu.vector_store %arg5[%110, %c0_28, %c0_29], %113 {strides = array<i32>} : memref<8x2x128xf32, #tpu.memory_space<vmem>>, vector<1x2x128xf32>,
    %c3_i32 = arith.constant 3 : i32
    %114 = arith.index_cast %c3_i32 : i32 to index
    %c0_30 = arith.constant 0 : index
    %c0_31 = arith.constant 0 : index
    %115 = vector.load %arg1[%114, %c0_30, %c0_31] : memref<8x2x384xf32, #tpu.memory_space<vmem>>, vector<1x2x384xf32>
    %116 = vector.shape_cast %115 : vector<1x2x384xf32> to vector<2x384xf32>
    %cst_32 = arith.constant dense<0.000000e+00> : vector<2x384xf32>
    %117 = tpu.matmul %109, %3, %cst_32 {dimension_numbers = #tpu.dot_dimension_numbers<[1], [0], [0], [1], [0, 0, 1, 1], [], []>} : vector<2x128xf32>, vector<128x384xf32>, vector<2x384xf32> -> vector<2x384xf32>
    %118 = vector.broadcast %4 : vector<1x384xf32> to vector<2x384xf32>
    %119 = arith.addf %117, %118 : vector<2x384xf32>
    %120 = vector.extract_strided_slice %116 {offsets = [0, 0], sizes = [2, 128], strides = [1, 1]} : vector<2x384xf32> to vector<2x128xf32>
    %121 = vector.extract_strided_slice %119 {offsets = [0, 0], sizes = [2, 128], strides = [1, 1]} : vector<2x384xf32> to vector<2x128xf32>
    %122 = arith.addf %120, %121 : vector<2x128xf32>
    %123 = arith.negf %122 : vector<2x128xf32>
    %124 = math.exp %123 : vector<2x128xf32>
    %cst_33 = arith.constant 1.000000e+00 : f32
    %125 = vector.broadcast %cst_33 : f32 to vector<2x128xf32>
    %126 = arith.addf %125, %124 : vector<2x128xf32>
    %127 = arith.divf %125, %126 : vector<2x128xf32>
    %128 = vector.extract_strided_slice %116 {offsets = [0, 128], sizes = [2, 128], strides = [1, 1]} : vector<2x384xf32> to vector<2x128xf32>
    %129 = vector.extract_strided_slice %119 {offsets = [0, 128], sizes = [2, 128], strides = [1, 1]} : vector<2x384xf32> to vector<2x128xf32>
    %130 = arith.addf %128, %129 : vector<2x128xf32>
    %131 = arith.negf %130 : vector<2x128xf32>
    %132 = math.exp %131 : vector<2x128xf32>
    %cst_34 = arith.constant 1.000000e+00 : f32
    %133 = vector.broadcast %cst_34 : f32 to vector<2x128xf32>
    %134 = arith.addf %133, %132 : vector<2x128xf32>
    %135 = arith.divf %133, %134 : vector<2x128xf32>
    %136 = vector.extract_strided_slice %116 {offsets = [0, 256], sizes = [2, 128], strides = [1, 1]} : vector<2x384xf32> to vector<2x128xf32>
    %137 = vector.extract_strided_slice %119 {offsets = [0, 256], sizes = [2, 128], strides = [1, 1]} : vector<2x384xf32> to vector<2x128xf32>
    %138 = arith.mulf %127, %137 : vector<2x128xf32>
    %139 = arith.addf %136, %138 : vector<2x128xf32>
    %140 = math.tanh %139 : vector<2x128xf32>
    %cst_35 = arith.constant 1.000000e+00 : f32
    %141 = vector.broadcast %cst_35 : f32 to vector<2x128xf32>
    %142 = arith.subf %141, %135 : vector<2x128xf32>
    %143 = arith.mulf %142, %140 : vector<2x128xf32>
    %144 = arith.mulf %135, %109 : vector<2x128xf32>
    %145 = arith.addf %143, %144 : vector<2x128xf32>
    %146 = arith.index_cast %c3_i32 : i32 to index
    %c0_36 = arith.constant 0 : index
    %c0_37 = arith.constant 0 : index
    %147 = vector.load %arg5[%146, %c0_36, %c0_37] : memref<8x2x128xf32, #tpu.memory_space<vmem>>, vector<1x2x128xf32>
    %148 = vector.shape_cast %147 : vector<1x2x128xf32> to vector<2x128xf32>
    %149 = vector.shape_cast %145 : vector<2x128xf32> to vector<1x2x128xf32>
    tpu.vector_store %arg5[%146, %c0_36, %c0_37], %149 {strides = array<i32>} : memref<8x2x128xf32, #tpu.memory_space<vmem>>, vector<1x2x128xf32>,
    %c4_i32 = arith.constant 4 : i32
    %150 = arith.index_cast %c4_i32 : i32 to index
    %c0_38 = arith.constant 0 : index
    %c0_39 = arith.constant 0 : index
    %151 = vector.load %arg1[%150, %c0_38, %c0_39] : memref<8x2x384xf32, #tpu.memory_space<vmem>>, vector<1x2x384xf32>
    %152 = vector.shape_cast %151 : vector<1x2x384xf32> to vector<2x384xf32>
    %cst_40 = arith.constant dense<0.000000e+00> : vector<2x384xf32>
    %153 = tpu.matmul %145, %3, %cst_40 {dimension_numbers = #tpu.dot_dimension_numbers<[1], [0], [0], [1], [0, 0, 1, 1], [], []>} : vector<2x128xf32>, vector<128x384xf32>, vector<2x384xf32> -> vector<2x384xf32>
    %154 = vector.broadcast %4 : vector<1x384xf32> to vector<2x384xf32>
    %155 = arith.addf %153, %154 : vector<2x384xf32>
    %156 = vector.extract_strided_slice %152 {offsets = [0, 0], sizes = [2, 128], strides = [1, 1]} : vector<2x384xf32> to vector<2x128xf32>
    %157 = vector.extract_strided_slice %155 {offsets = [0, 0], sizes = [2, 128], strides = [1, 1]} : vector<2x384xf32> to vector<2x128xf32>
    %158 = arith.addf %156, %157 : vector<2x128xf32>
    %159 = arith.negf %158 : vector<2x128xf32>
    %160 = math.exp %159 : vector<2x128xf32>
    %cst_41 = arith.constant 1.000000e+00 : f32
    %161 = vector.broadcast %cst_41 : f32 to vector<2x128xf32>
    %162 = arith.addf %161, %160 : vector<2x128xf32>
    %163 = arith.divf %161, %162 : vector<2x128xf32>
    %164 = vector.extract_strided_slice %152 {offsets = [0, 128], sizes = [2, 128], strides = [1, 1]} : vector<2x384xf32> to vector<2x128xf32>
    %165 = vector.extract_strided_slice %155 {offsets = [0, 128], sizes = [2, 128], strides = [1, 1]} : vector<2x384xf32> to vector<2x128xf32>
    %166 = arith.addf %164, %165 : vector<2x128xf32>
    %167 = arith.negf %166 : vector<2x128xf32>
    %168 = math.exp %167 : vector<2x128xf32>
    %cst_42 = arith.constant 1.000000e+00 : f32
    %169 = vector.broadcast %cst_42 : f32 to vector<2x128xf32>
    %170 = arith.addf %169, %168 : vector<2x128xf32>
    %171 = arith.divf %169, %170 : vector<2x128xf32>
    %172 = vector.extract_strided_slice %152 {offsets = [0, 256], sizes = [2, 128], strides = [1, 1]} : vector<2x384xf32> to vector<2x128xf32>
    %173 = vector.extract_strided_slice %155 {offsets = [0, 256], sizes = [2, 128], strides = [1, 1]} : vector<2x384xf32> to vector<2x128xf32>
    %174 = arith.mulf %163, %173 : vector<2x128xf32>
    %175 = arith.addf %172, %174 : vector<2x128xf32>
    %176 = math.tanh %175 : vector<2x128xf32>
    %cst_43 = arith.constant 1.000000e+00 : f32
    %177 = vector.broadcast %cst_43 : f32 to vector<2x128xf32>
    %178 = arith.subf %177, %171 : vector<2x128xf32>
    %179 = arith.mulf %178, %176 : vector<2x128xf32>
    %180 = arith.mulf %171, %145 : vector<2x128xf32>
    %181 = arith.addf %179, %180 : vector<2x128xf32>
    %182 = arith.index_cast %c4_i32 : i32 to index
    %c0_44 = arith.constant 0 : index
    %c0_45 = arith.constant 0 : index
    %183 = vector.load %arg5[%182, %c0_44, %c0_45] : memref<8x2x128xf32, #tpu.memory_space<vmem>>, vector<1x2x128xf32>
    %184 = vector.shape_cast %183 : vector<1x2x128xf32> to vector<2x128xf32>
    %185 = vector.shape_cast %181 : vector<2x128xf32> to vector<1x2x128xf32>
    tpu.vector_store %arg5[%182, %c0_44, %c0_45], %185 {strides = array<i32>} : memref<8x2x128xf32, #tpu.memory_space<vmem>>, vector<1x2x128xf32>,
    %c5_i32 = arith.constant 5 : i32
    %186 = arith.index_cast %c5_i32 : i32 to index
    %c0_46 = arith.constant 0 : index
    %c0_47 = arith.constant 0 : index
    %187 = vector.load %arg1[%186, %c0_46, %c0_47] : memref<8x2x384xf32, #tpu.memory_space<vmem>>, vector<1x2x384xf32>
    %188 = vector.shape_cast %187 : vector<1x2x384xf32> to vector<2x384xf32>
    %cst_48 = arith.constant dense<0.000000e+00> : vector<2x384xf32>
    %189 = tpu.matmul %181, %3, %cst_48 {dimension_numbers = #tpu.dot_dimension_numbers<[1], [0], [0], [1], [0, 0, 1, 1], [], []>} : vector<2x128xf32>, vector<128x384xf32>, vector<2x384xf32> -> vector<2x384xf32>
    %190 = vector.broadcast %4 : vector<1x384xf32> to vector<2x384xf32>
    %191 = arith.addf %189, %190 : vector<2x384xf32>
    %192 = vector.extract_strided_slice %188 {offsets = [0, 0], sizes = [2, 128], strides = [1, 1]} : vector<2x384xf32> to vector<2x128xf32>
    %193 = vector.extract_strided_slice %191 {offsets = [0, 0], sizes = [2, 128], strides = [1, 1]} : vector<2x384xf32> to vector<2x128xf32>
    %194 = arith.addf %192, %193 : vector<2x128xf32>
    %195 = arith.negf %194 : vector<2x128xf32>
    %196 = math.exp %195 : vector<2x128xf32>
    %cst_49 = arith.constant 1.000000e+00 : f32
    %197 = vector.broadcast %cst_49 : f32 to vector<2x128xf32>
    %198 = arith.addf %197, %196 : vector<2x128xf32>
    %199 = arith.divf %197, %198 : vector<2x128xf32>
    %200 = vector.extract_strided_slice %188 {offsets = [0, 128], sizes = [2, 128], strides = [1, 1]} : vector<2x384xf32> to vector<2x128xf32>
    %201 = vector.extract_strided_slice %191 {offsets = [0, 128], sizes = [2, 128], strides = [1, 1]} : vector<2x384xf32> to vector<2x128xf32>
    %202 = arith.addf %200, %201 : vector<2x128xf32>
    %203 = arith.negf %202 : vector<2x128xf32>
    %204 = math.exp %203 : vector<2x128xf32>
    %cst_50 = arith.constant 1.000000e+00 : f32
    %205 = vector.broadcast %cst_50 : f32 to vector<2x128xf32>
    %206 = arith.addf %205, %204 : vector<2x128xf32>
    %207 = arith.divf %205, %206 : vector<2x128xf32>
    %208 = vector.extract_strided_slice %188 {offsets = [0, 256], sizes = [2, 128], strides = [1, 1]} : vector<2x384xf32> to vector<2x128xf32>
    %209 = vector.extract_strided_slice %191 {offsets = [0, 256], sizes = [2, 128], strides = [1, 1]} : vector<2x384xf32> to vector<2x128xf32>
    %210 = arith.mulf %199, %209 : vector<2x128xf32>
    %211 = arith.addf %208, %210 : vector<2x128xf32>
    %212 = math.tanh %211 : vector<2x128xf32>
    %cst_51 = arith.constant 1.000000e+00 : f32
    %213 = vector.broadcast %cst_51 : f32 to vector<2x128xf32>
    %214 = arith.subf %213, %207 : vector<2x128xf32>
    %215 = arith.mulf %214, %212 : vector<2x128xf32>
    %216 = arith.mulf %207, %181 : vector<2x128xf32>
    %217 = arith.addf %215, %216 : vector<2x128xf32>
    %218 = arith.index_cast %c5_i32 : i32 to index
    %c0_52 = arith.constant 0 : index
    %c0_53 = arith.constant 0 : index
    %219 = vector.load %arg5[%218, %c0_52, %c0_53] : memref<8x2x128xf32, #tpu.memory_space<vmem>>, vector<1x2x128xf32>
    %220 = vector.shape_cast %219 : vector<1x2x128xf32> to vector<2x128xf32>
    %221 = vector.shape_cast %217 : vector<2x128xf32> to vector<1x2x128xf32>
    tpu.vector_store %arg5[%218, %c0_52, %c0_53], %221 {strides = array<i32>} : memref<8x2x128xf32, #tpu.memory_space<vmem>>, vector<1x2x128xf32>,
    %c6_i32 = arith.constant 6 : i32
    %222 = arith.index_cast %c6_i32 : i32 to index
    %c0_54 = arith.constant 0 : index
    %c0_55 = arith.constant 0 : index
    %223 = vector.load %arg1[%222, %c0_54, %c0_55] : memref<8x2x384xf32, #tpu.memory_space<vmem>>, vector<1x2x384xf32>
    %224 = vector.shape_cast %223 : vector<1x2x384xf32> to vector<2x384xf32>
    %cst_56 = arith.constant dense<0.000000e+00> : vector<2x384xf32>
    %225 = tpu.matmul %217, %3, %cst_56 {dimension_numbers = #tpu.dot_dimension_numbers<[1], [0], [0], [1], [0, 0, 1, 1], [], []>} : vector<2x128xf32>, vector<128x384xf32>, vector<2x384xf32> -> vector<2x384xf32>
    %226 = vector.broadcast %4 : vector<1x384xf32> to vector<2x384xf32>
    %227 = arith.addf %225, %226 : vector<2x384xf32>
    %228 = vector.extract_strided_slice %224 {offsets = [0, 0], sizes = [2, 128], strides = [1, 1]} : vector<2x384xf32> to vector<2x128xf32>
    %229 = vector.extract_strided_slice %227 {offsets = [0, 0], sizes = [2, 128], strides = [1, 1]} : vector<2x384xf32> to vector<2x128xf32>
    %230 = arith.addf %228, %229 : vector<2x128xf32>
    %231 = arith.negf %230 : vector<2x128xf32>
    %232 = math.exp %231 : vector<2x128xf32>
    %cst_57 = arith.constant 1.000000e+00 : f32
    %233 = vector.broadcast %cst_57 : f32 to vector<2x128xf32>
    %234 = arith.addf %233, %232 : vector<2x128xf32>
    %235 = arith.divf %233, %234 : vector<2x128xf32>
    %236 = vector.extract_strided_slice %224 {offsets = [0, 128], sizes = [2, 128], strides = [1, 1]} : vector<2x384xf32> to vector<2x128xf32>
    %237 = vector.extract_strided_slice %227 {offsets = [0, 128], sizes = [2, 128], strides = [1, 1]} : vector<2x384xf32> to vector<2x128xf32>
    %238 = arith.addf %236, %237 : vector<2x128xf32>
    %239 = arith.negf %238 : vector<2x128xf32>
    %240 = math.exp %239 : vector<2x128xf32>
    %cst_58 = arith.constant 1.000000e+00 : f32
    %241 = vector.broadcast %cst_58 : f32 to vector<2x128xf32>
    %242 = arith.addf %241, %240 : vector<2x128xf32>
    %243 = arith.divf %241, %242 : vector<2x128xf32>
    %244 = vector.extract_strided_slice %224 {offsets = [0, 256], sizes = [2, 128], strides = [1, 1]} : vector<2x384xf32> to vector<2x128xf32>
    %245 = vector.extract_strided_slice %227 {offsets = [0, 256], sizes = [2, 128], strides = [1, 1]} : vector<2x384xf32> to vector<2x128xf32>
    %246 = arith.mulf %235, %245 : vector<2x128xf32>
    %247 = arith.addf %244, %246 : vector<2x128xf32>
    %248 = math.tanh %247 : vector<2x128xf32>
    %cst_59 = arith.constant 1.000000e+00 : f32
    %249 = vector.broadcast %cst_59 : f32 to vector<2x128xf32>
    %250 = arith.subf %249, %243 : vector<2x128xf32>
    %251 = arith.mulf %250, %248 : vector<2x128xf32>
    %252 = arith.mulf %243, %217 : vector<2x128xf32>
    %253 = arith.addf %251, %252 : vector<2x128xf32>
    %254 = arith.index_cast %c6_i32 : i32 to index
    %c0_60 = arith.constant 0 : index
    %c0_61 = arith.constant 0 : index
    %255 = vector.load %arg5[%254, %c0_60, %c0_61] : memref<8x2x128xf32, #tpu.memory_space<vmem>>, vector<1x2x128xf32>
    %256 = vector.shape_cast %255 : vector<1x2x128xf32> to vector<2x128xf32>
    %257 = vector.shape_cast %253 : vector<2x128xf32> to vector<1x2x128xf32>
    tpu.vector_store %arg5[%254, %c0_60, %c0_61], %257 {strides = array<i32>} : memref<8x2x128xf32, #tpu.memory_space<vmem>>, vector<1x2x128xf32>,
    %c7_i32 = arith.constant 7 : i32
    %258 = arith.index_cast %c7_i32 : i32 to index
    %c0_62 = arith.constant 0 : index
    %c0_63 = arith.constant 0 : index
    %259 = vector.load %arg1[%258, %c0_62, %c0_63] : memref<8x2x384xf32, #tpu.memory_space<vmem>>, vector<1x2x384xf32>
    %260 = vector.shape_cast %259 : vector<1x2x384xf32> to vector<2x384xf32>
    %cst_64 = arith.constant dense<0.000000e+00> : vector<2x384xf32>
    %261 = tpu.matmul %253, %3, %cst_64 {dimension_numbers = #tpu.dot_dimension_numbers<[1], [0], [0], [1], [0, 0, 1, 1], [], []>} : vector<2x128xf32>, vector<128x384xf32>, vector<2x384xf32> -> vector<2x384xf32>
    %262 = vector.broadcast %4 : vector<1x384xf32> to vector<2x384xf32>
    %263 = arith.addf %261, %262 : vector<2x384xf32>
    %264 = vector.extract_strided_slice %260 {offsets = [0, 0], sizes = [2, 128], strides = [1, 1]} : vector<2x384xf32> to vector<2x128xf32>
    %265 = vector.extract_strided_slice %263 {offsets = [0, 0], sizes = [2, 128], strides = [1, 1]} : vector<2x384xf32> to vector<2x128xf32>
    %266 = arith.addf %264, %265 : vector<2x128xf32>
    %267 = arith.negf %266 : vector<2x128xf32>
    %268 = math.exp %267 : vector<2x128xf32>
    %cst_65 = arith.constant 1.000000e+00 : f32
    %269 = vector.broadcast %cst_65 : f32 to vector<2x128xf32>
    %270 = arith.addf %269, %268 : vector<2x128xf32>
    %271 = arith.divf %269, %270 : vector<2x128xf32>
    %272 = vector.extract_strided_slice %260 {offsets = [0, 128], sizes = [2, 128], strides = [1, 1]} : vector<2x384xf32> to vector<2x128xf32>
    %273 = vector.extract_strided_slice %263 {offsets = [0, 128], sizes = [2, 128], strides = [1, 1]} : vector<2x384xf32> to vector<2x128xf32>
    %274 = arith.addf %272, %273 : vector<2x128xf32>
    %275 = arith.negf %274 : vector<2x128xf32>
    %276 = math.exp %275 : vector<2x128xf32>
    %cst_66 = arith.constant 1.000000e+00 : f32
    %277 = vector.broadcast %cst_66 : f32 to vector<2x128xf32>
    %278 = arith.addf %277, %276 : vector<2x128xf32>
    %279 = arith.divf %277, %278 : vector<2x128xf32>
    %280 = vector.extract_strided_slice %260 {offsets = [0, 256], sizes = [2, 128], strides = [1, 1]} : vector<2x384xf32> to vector<2x128xf32>
    %281 = vector.extract_strided_slice %263 {offsets = [0, 256], sizes = [2, 128], strides = [1, 1]} : vector<2x384xf32> to vector<2x128xf32>
    %282 = arith.mulf %271, %281 : vector<2x128xf32>
    %283 = arith.addf %280, %282 : vector<2x128xf32>
    %284 = math.tanh %283 : vector<2x128xf32>
    %cst_67 = arith.constant 1.000000e+00 : f32
    %285 = vector.broadcast %cst_67 : f32 to vector<2x128xf32>
    %286 = arith.subf %285, %279 : vector<2x128xf32>
    %287 = arith.mulf %286, %284 : vector<2x128xf32>
    %288 = arith.mulf %279, %253 : vector<2x128xf32>
    %289 = arith.addf %287, %288 : vector<2x128xf32>
    %290 = arith.index_cast %c7_i32 : i32 to index
    %c0_68 = arith.constant 0 : index
    %c0_69 = arith.constant 0 : index
    %291 = vector.load %arg5[%290, %c0_68, %c0_69] : memref<8x2x128xf32, #tpu.memory_space<vmem>>, vector<1x2x128xf32>
    %292 = vector.shape_cast %291 : vector<1x2x128xf32> to vector<2x128xf32>
    %293 = vector.shape_cast %289 : vector<2x128xf32> to vector<1x2x128xf32>
    tpu.vector_store %arg5[%290, %c0_68, %c0_69], %293 {strides = array<i32>} : memref<8x2x128xf32, #tpu.memory_space<vmem>>, vector<1x2x128xf32>,
    %c8_i32 = arith.constant 8 : i32
    %c0_70 = arith.constant 0 : index
    %c0_71 = arith.constant 0 : index
    %294 = vector.load %arg7[%c0_70, %c0_71] : memref<2x128xf32, #tpu.memory_space<vmem>>, vector<2x128xf32>
    tpu.vector_store %arg7[%c0_70, %c0_71], %289 {strides = array<i32>} : memref<2x128xf32, #tpu.memory_space<vmem>>, vector<2x128xf32>,
    %c0_i32_72 = arith.constant 0 : i32
    %295 = arith.cmpi eq, %arg0, %c0_i32_72 : i32
    %296 = arith.extui %295 : i1 to i32
    %c0_i32_73 = arith.constant 0 : i32
    %297 = arith.cmpi ne, %296, %c0_i32_73 : i32
    scf.if %297 {
      %c0_74 = arith.constant 0 : index
      %c0_75 = arith.constant 0 : index
      %298 = vector.load %arg6[%c0_74, %c0_75] : memref<2x128xf32, #tpu.memory_space<vmem>>, vector<2x128xf32>
      tpu.vector_store %arg6[%c0_74, %c0_75], %289 {strides = array<i32>} : memref<2x128xf32, #tpu.memory_space<vmem>>, vector<2x128xf32>,
    } else {
    }
    return
  }
  func.func @transform_0(%arg0: i32) -> (i32, i32, i32) {
    %c0_i32 = arith.constant 0 : i32
    %c0_i32_0 = arith.constant 0 : i32
    %c0_i32_1 = arith.constant 0 : i32
    return %arg0, %c0_i32, %c0_i32_0 : i32, i32, i32
  }
  func.func @transform_1(%arg0: i32) -> (i32, i32) {
    %c0_i32 = arith.constant 0 : i32
    %c0_i32_0 = arith.constant 0 : i32
    %c0_i32_1 = arith.constant 0 : i32
    return %c0_i32, %c0_i32_0 : i32, i32
  }
  func.func @transform_2(%arg0: i32) -> (i32, i32) {
    %c0_i32 = arith.constant 0 : i32
    %c0_i32_0 = arith.constant 0 : i32
    %c0_i32_1 = arith.constant 0 : i32
    return %c0_i32, %c0_i32_0 : i32, i32
  }
  func.func @transform_3(%arg0: i32) -> (i32, i32) {
    %c0_i32 = arith.constant 0 : i32
    %c0_i32_0 = arith.constant 0 : i32
    %c0_i32_1 = arith.constant 0 : i32
    return %c0_i32, %c0_i32_0 : i32, i32
  }
  func.func @transform_4(%arg0: i32) -> (i32, i32, i32) {
    %c0_i32 = arith.constant 0 : i32
    %c0_i32_0 = arith.constant 0 : i32
    %c0_i32_1 = arith.constant 0 : i32
    return %arg0, %c0_i32, %c0_i32_0 : i32, i32, i32
  }
  func.func @transform_5(%arg0: i32) -> (i32, i32) {
    %c0_i32 = arith.constant 0 : i32
    %c0_i32_0 = arith.constant 0 : i32
    %c0_i32_1 = arith.constant 0 : i32
    return %c0_i32, %c0_i32_0 : i32, i32
  }
}

module attributes {stable_mosaic.version = 11 : i64} {
  func.func @_matmul_bias_kernel(%arg0: i32, %arg1: i32, %arg2: i32, %arg3: memref<16x128xf32, #tpu.memory_space<vmem>>, %arg4: memref<128x128xf32, #tpu.memory_space<vmem>>, %arg5: memref<1x128xf32, #tpu.memory_space<vmem>>, %arg6: memref<16x128xf32, #tpu.memory_space<vmem>>, %arg7: memref<16x128xf32, #tpu.memory_space<vmem>>) attributes {dimension_semantics = [#tpu.dimension_semantics<parallel>, #tpu.dimension_semantics<parallel>, #tpu.dimension_semantics<arbitrary>], iteration_bounds = array<i64: 1, 1, 1>, scalar_prefetch = 0 : i64, scratch_operands = 1 : i64, tpu.core_type = #tpu.core_type<tc>, window_params = [{transform_indices = @transform_0, window_bounds = array<i64: 16, 128>}, {transform_indices = @transform_1, window_bounds = array<i64: 128, 128>}, {transform_indices = @transform_2, window_bounds = array<i64: 1, 128>}, {transform_indices = @transform_3, window_bounds = array<i64: 16, 128>}]} {
    %c0_i32 = arith.constant 0 : i32
    %0 = arith.cmpi eq, %arg2, %c0_i32 : i32
    %1 = arith.extui %0 : i1 to i32
    %c0_i32_0 = arith.constant 0 : i32
    %2 = arith.cmpi ne, %1, %c0_i32_0 : i32
    scf.if %2 {
      %cst_10 = arith.constant 0.000000e+00 : f32
      %12 = vector.broadcast %cst_10 : f32 to vector<16x128xf32>
      %c0_11 = arith.constant 0 : index
      %c0_12 = arith.constant 0 : index
      %13 = vector.load %arg7[%c0_11, %c0_12] : memref<16x128xf32, #tpu.memory_space<vmem>>, vector<16x128xf32>
      tpu.vector_store %arg7[%c0_11, %c0_12], %12 {strides = array<i32>} : memref<16x128xf32, #tpu.memory_space<vmem>>, vector<16x128xf32>,
    } else {
    }
    %c0 = arith.constant 0 : index
    %c0_1 = arith.constant 0 : index
    %3 = vector.load %arg7[%c0, %c0_1] : memref<16x128xf32, #tpu.memory_space<vmem>>, vector<16x128xf32>
    %c0_2 = arith.constant 0 : index
    %c0_3 = arith.constant 0 : index
    %4 = vector.load %arg3[%c0_2, %c0_3] : memref<16x128xf32, #tpu.memory_space<vmem>>, vector<16x128xf32>
    %c0_4 = arith.constant 0 : index
    %c0_5 = arith.constant 0 : index
    %5 = vector.load %arg4[%c0_4, %c0_5] : memref<128x128xf32, #tpu.memory_space<vmem>>, vector<128x128xf32>
    %cst = arith.constant dense<0.000000e+00> : vector<16x128xf32>
    %6 = tpu.matmul %4, %5, %cst {dimension_numbers = #tpu.dot_dimension_numbers<[1], [0], [0], [1], [0, 0, 1, 1], [], []>} : vector<16x128xf32>, vector<128x128xf32>, vector<16x128xf32> -> vector<16x128xf32>
    %7 = arith.addf %3, %6 : vector<16x128xf32>
    %c0_6 = arith.constant 0 : index
    %c0_7 = arith.constant 0 : index
    %8 = vector.load %arg7[%c0_6, %c0_7] : memref<16x128xf32, #tpu.memory_space<vmem>>, vector<16x128xf32>
    tpu.vector_store %arg7[%c0_6, %c0_7], %7 {strides = array<i32>} : memref<16x128xf32, #tpu.memory_space<vmem>>, vector<16x128xf32>,
    %c0_i32_8 = arith.constant 0 : i32
    %9 = arith.cmpi eq, %arg2, %c0_i32_8 : i32
    %10 = arith.extui %9 : i1 to i32
    %c0_i32_9 = arith.constant 0 : i32
    %11 = arith.cmpi ne, %10, %c0_i32_9 : i32
    scf.if %11 {
      %c0_10 = arith.constant 0 : index
      %c0_11 = arith.constant 0 : index
      %12 = vector.load %arg7[%c0_10, %c0_11] : memref<16x128xf32, #tpu.memory_space<vmem>>, vector<16x128xf32>
      %c0_12 = arith.constant 0 : index
      %c0_13 = arith.constant 0 : index
      %13 = vector.load %arg5[%c0_12, %c0_13] : memref<1x128xf32, #tpu.memory_space<vmem>>, vector<1x128xf32>
      %14 = vector.broadcast %13 : vector<1x128xf32> to vector<16x128xf32>
      %15 = arith.addf %12, %14 : vector<16x128xf32>
      %c0_14 = arith.constant 0 : index
      %c0_15 = arith.constant 0 : index
      %16 = vector.load %arg6[%c0_14, %c0_15] : memref<16x128xf32, #tpu.memory_space<vmem>>, vector<16x128xf32>
      tpu.vector_store %arg6[%c0_14, %c0_15], %15 {strides = array<i32>} : memref<16x128xf32, #tpu.memory_space<vmem>>, vector<16x128xf32>,
    } else {
    }
    return
  }
  func.func @transform_0(%arg0: i32, %arg1: i32, %arg2: i32) -> (i32, i32) {
    %c0_i32 = arith.constant 0 : i32
    return %arg0, %arg2 : i32, i32
  }
  func.func @transform_1(%arg0: i32, %arg1: i32, %arg2: i32) -> (i32, i32) {
    %c0_i32 = arith.constant 0 : i32
    return %arg2, %arg1 : i32, i32
  }
  func.func @transform_2(%arg0: i32, %arg1: i32, %arg2: i32) -> (i32, i32) {
    %c0_i32 = arith.constant 0 : i32
    %c0_i32_0 = arith.constant 0 : i32
    return %c0_i32, %arg1 : i32, i32
  }
  func.func @transform_3(%arg0: i32, %arg1: i32, %arg2: i32) -> (i32, i32) {
    %c0_i32 = arith.constant 0 : i32
    return %arg0, %arg1 : i32, i32
  }
}

</mosaic_0001>

<bundles_post_ra>
// kernel: gru_model_forward.5
= control target key start
LH: loop header
LB: loop body
LE: loop exit
PB: predicated region body
PF: predicated region fallthrough
CT: control target
= control target key end

     0   :  { %s357_s0 = inlined_call_operand.vmem [shape: f32[16,128], index: 0, kind: input, shape index: {}]   ;;  %s358_s1 = inlined_call_operand.vmem [shape: f32[128,128], index: 1, kind: input, shape index: {}]   ;;  %s359_s2 = inlined_call_operand.vmem [shape: f32[1,128], index: 2, kind: input, shape index: {}]   ;;  %s360_s3 = inlined_call_operand.hbm [shape: f32[16,128], index: 3, kind: output, shape index: {}]  }
   0x1   :  { %v25_v0 = vld [vmem:[%s358_s1] sm:$0xff]  ;;  %v26_v1 = vld [vmem:[%s358_s1 + $0x8] sm:$0xff]  ;;  %v27_v2 = vld [vmem:[%s358_s1 + $0x10] sm:$0xff] }
   0x2   :  { %v206_v3 = vpack.c.bf16 %v26_v1, %v25_v0  ;;  %v28_v4 = vld [vmem:[%s358_s1 + $0x18] sm:$0xff]  ;;  %v29_v6 = vld [vmem:[%s358_s1 + $0x20] sm:$0xff]  ;;  %v30_v7 = vld [vmem:[%s358_s1 + $0x28] sm:$0xff] }
   0x3   :  { %v210_v5 = vpack.c.bf16 %v28_v4, %v27_v2  ;;  %v214_v8 = vpack.c.bf16 %v30_v7, %v29_v6  ;;  %v23_v9 = vld [vmem:[%s357_s0] sm:$0xff]  ;;  %v31_v10 = vld [vmem:[%s358_s1 + $0x30] sm:$0xff]  ;;  %v32_v11 = vld [vmem:[%s358_s1 + $0x38] sm:$0xff] }
   0x4   :  { %207 = vmatprep.subr.bf16.mxu0 %v206_v3  ;;  %203 = vmatprep.mubr.f32.mxu0 %v23_v9 }
   0x5   :  { %209 = vmatpush3.bf16.msra.mxu0 %v206_v3 }
   0x6   :  { %211 = vmatprep.subr.bf16.mxu0 %v210_v5 }
   0x7   :  { %8 = vsyncpa [#allocation4], 0  ;;  %v218_v12 = vpack.c.bf16 %v32_v11, %v31_v10  ;;  %v33_v13 = vld [vmem:[%s358_s1 + $0x40] sm:$0xff]  ;;  %v34_v14 = vld [vmem:[%s358_s1 + $0x48] sm:$0xff]  ;;  %s265_s23 = smov [#allocation3]  }
   0x8   :  { %v222_v15 = vpack.c.bf16 %v34_v14, %v33_v13  ;;  %v35_v16 = vld [vmem:[%s358_s1 + $0x50] sm:$0xff]  ;;  %v36_v17 = vld [vmem:[%s358_s1 + $0x58] sm:$0xff]  ;;  %v37_v19 = vld [vmem:[%s358_s1 + $0x60] sm:$0xff]  ;;  %s141_s24 = sshll.u32 %s265_s23, 4  ;;  %s142_s24 = int_to_ptr.vmem [resolvable:$true] %s141_s24 }
   0x9   :  { %213 = vmatpush3.bf16.msra.mxu0 %v210_v5  ;;  %v226_v18 = vpack.c.bf16 %v36_v17, %v35_v16  ;;  %v38_v20 = vld [vmem:[%s358_s1 + $0x68] sm:$0xff]  ;;  %v39_v22 = vld [vmem:[%s358_s1 + $0x70] sm:$0xff]  ;;  %v40_v23 = vld [vmem:[%s358_s1 + $0x78] sm:$0xff]  ;;  %s241_s1 = scalar_lea.vmem %s142_s24, 256  ;;  %p246_p1 = scmp.lt.s32.totalorder %s142_s24, %s142_s24 }
   0xa   :  { %215 = vmatprep.subr.bf16.mxu0 %v214_v8  ;;  %v230_v21 = vpack.c.bf16 %v38_v20, %v37_v19  ;;  %v234_v24 = vpack.c.bf16 %v40_v23, %v39_v22  ;;  %v24_v25 = vld [vmem:[%s357_s0 + $0x8] sm:$0xff]  ;;  %v152_v26 = vld [vmem:[%s359_s2] ss:$0 sm:$0xff]  ;;  %p242_p0 = scmp.ne.s32.totalorder %s142_s24, %s241_s1  ;;  %p247_p2 = scmp.lt.s32.totalorder %s241_s1, %s241_s1 }
   0xc   :  { %p248_p3 = por %p247_p2, %p246_p1 }
   0xd   :  { %217 = vmatpush3.bf16.msra.mxu0 %v214_v8 }
   0xe   :  { %219 = vmatprep.subr.bf16.mxu0 %v218_v12  ;;  %p249_p4 = pnand %p248_p3, %p242_p0 }
  0x11   :  { %221 = vmatpush3.bf16.msra.mxu0 %v218_v12 }
  0x12   :  { %223 = vmatprep.subr.bf16.mxu0 %v222_v15 }
  0x15   :  { %225 = vmatpush3.bf16.msra.mxu0 %v222_v15 }
  0x16   :  { %227 = vmatprep.subr.bf16.mxu0 %v226_v18 }
  0x19   :  { %229 = vmatpush3.bf16.msra.mxu0 %v226_v18 }
  0x1a   :  { %231 = vmatprep.subr.bf16.mxu0 %v230_v21 }
  0x1d   :  { %233 = vmatpush3.bf16.msra.mxu0 %v230_v21 }
  0x1e   :  { %235 = vmatprep.subr.bf16.mxu0 %v234_v24 }
  0x21   :  { %237 = vmatpush3.bf16.msra.mxu0 %v234_v24 }
  0x24   :  { %204 = vmatmul.mubr.f32.vlgmr.msra.gmra.mrb[0].mxu0 %v24_v25 }
  0xf7   :  { %v205_v27 = vpop.f32.mrb[0].mxu0 }
  0xf8   :  { %v133_v28 = vadd.f32 %v205_v27, %v152_v26  ;;  %v107_v29 = vpop.f32.mrb[1].mxu0 }
  0xf9   :  { %v132_v30 = vadd.f32 %v152_v26, %v107_v29 }
  0xfa   :  { %135 = vst [vmem:[#allocation3 + $0x8] sm:$0xff] %v133_v28 }
  0xfb   :  { %134 = vst [vmem:[#allocation3] sm:$0xff] %v132_v30 }
  0xfc   :  { %252 = shalt.err (!%p249_p4)
}
  0xfd   :  { %s253_s2 = scalar_lea.hbm %s360_s3, 256 }
  0xfe   :  { %p254_p5 = scmp.ne.s32.totalorder %s360_s3, %s253_s2  ;;  %p257_p6 = scmp.lt.u32.totalorder %s253_s2, %s360_s3 }
 0x100   :  { %p259_p7 = pnand %p257_p6, %p254_p5 }
 0x102   :  { %262 = shalt.err (!%p259_p7)
}
 0x103   :  { %s266_s30 = smov 128   ;;  %s267_s4 = smov 8  }
 0x104   :  { %147 = dma.vmem_to_hbm [thread:$0]  %s142_s24, 256, %s360_s3, [#allocation4], %s266_s30, %s266_s30, %s267_s4  }
 0x105   :  { %263 = dma.done.wait [#allocation4], 256  }
 0x106   :  { %264 = vsyncadd [#allocation4], 4294967040 }
 0x107   :  { %151 = vsyncpa [#allocation4], 1 }

// kernel: gru_model_forward.3
= control target key start
LH: loop header
LB: loop body
LE: loop exit
PB: predicated region body
PF: predicated region fallthrough
CT: control target
= control target key end

     0   :  { %v295_v3 = vmov 0.0   ;;  %vm44_vm0 = vcmask 261120   ;;  %v226_v21 = vlaneseq  ;;  %s379_s1 = inlined_call_operand.vmem [shape: f32[32,384], index: 1, kind: input, shape index: {}]   ;;  %s380_s0 = inlined_call_operand.vmem [shape: f32[16,32], index: 0, kind: input, shape index: {}]   ;;  %s381_s2 = inlined_call_operand.vmem [shape: f32[1,384], index: 2, kind: input, shape index: {}]   ;;  %s382_s3 = inlined_call_operand.vmem [shape: f32[16,384], index: 3, kind: output, shape index: {}]  }
   0x1   :  { %v33_v0 = vld [vmem:[%s379_s1 + $0x8] sm:$0xff]  ;;  %v36_v1 = vld [vmem:[%s379_s1 + $0x20] sm:$0xff]  ;;  %115 = vmatprep.mubr.f32.mxu0 %v295_v3  ;;  %v35_v5 = vld [vmem:[%s379_s1 + $0x18] sm:$0xff] }
   0x2   :  { %v32_v2 = vld [vmem:[%s379_s1] sm:$0xff]  ;;  %v278_v4 = vpack.c.bf16 %v36_v1, %v33_v0  ;;  %v34_v6 = vld [vmem:[%s379_s1 + $0x10] sm:$0xff]  ;;  %v37_v7 = vld [vmem:[%s379_s1 + $0x28] sm:$0xff]  ;;  %v227_v22 = vshrl.u32 %v226_v21, 7 }
   0x3   :  { %v280_v8 = vpack.c.bf16 %v35_v5, %v32_v2  ;;  %v286_v9 = vpack.c.bf16 %v37_v7, %v34_v6  ;;  %v39_v10 = vld [vmem:[%s379_s1 + $0x38] sm:$0xff]  ;;  %v42_v11 = vld [vmem:[%s379_s1 + $0x50] sm:$0xff]  ;;  %v41_v14 = vld [vmem:[%s379_s1 + $0x48] sm:$0xff] }
   0x4   :  { %v38_v12 = vld [vmem:[%s379_s1 + $0x30] sm:$0xff]  ;;  %279 = vmatprep.subr.bf16.mxu0 %v278_v4  ;;  %v282_v13 = vpack.c.bf16 %v42_v11, %v39_v10  ;;  %v40_v15 = vld [vmem:[%s379_s1 + $0x40] sm:$0xff]  ;;  %v43_v16 = vld [vmem:[%s379_s1 + $0x58] sm:$0xff]  ;;  %v228_v23 = vsub.s32 0, %v227_v22  ;;  %v232_v25 = vsub.s32 1, %v227_v22  ;;  %v236_v26 = vsub.s32 2, %v227_v22 }
   0x5   :  { %281 = vmatpush1.bf16.msra.mxu0 %v280_v8  ;;  %287 = vmatprep.subr.bf16.mxu1 %v286_v9  ;;  %v284_v17 = vpack.c.bf16 %v41_v14, %v38_v12  ;;  %v290_v18 = vpack.c.bf16 %v43_v16, %v40_v15  ;;  %v30_v19 = vld [vmem:[%s380_s0] sm:$0xff]  ;;  %v31_v20 = vld [vmem:[%s380_s0 + $0x8] sm:$0xff] }
   0x6   :  { %283 = vmatprep.subr.bf16.mxu0 %v282_v13  ;;  %289 = vmatpush3.bf16.msra.mxu1 %v286_v9  ;;  %v224_v24 = vld [vmem:[%s381_s2] sm:$0x7] }
   0x7   :  { %291 = vmatprep.subr.bf16.mxu1 %v290_v18  ;;  %275 = vmatprep.mubr.msk.f32.mxu1 %vm44_vm0, %v30_v19  ;;  %v229_v27 = vrot.slane %v224_v24, %v228_v23  ;;  %v233_v28 = vrot.slane %v224_v24, %v232_v25  ;;  %v237_v29 = vrot.slane %v224_v24, %v236_v26 }
   0x9   :  { %285 = vmatpush1.bf16.msra.mxu0 %v284_v17 }
   0xa   :  { %293 = vmatpush3.bf16.msra.mxu1 %v290_v18 }
   0xc   :  { %257 = vmatmul.mubr.msk.f32.vlgmr.msra.gmra.mrb[0].mxu0 %vm44_vm0, %v30_v19 }
   0xd   :  { %121 = vmatprep.mubr.f32.mxu0 %v295_v3  ;;  %276 = vmatmul.mubr.msk.f32.vlgmr.msra.gmra.mrb[0].mxu1 %vm44_vm0, %v31_v20 }
  0x10   :  { %258 = vmatmul.mubr.msk.f32.gmra.mrb[2].mxu0 %vm44_vm0, %v31_v20 }
  0xdf   :  { %v117_v30 = vpop.f32.mrb[0].mxu0 }
  0xe0   :  { %v241_v31 = vadd.f32 %v229_v27, %v117_v30  ;;  %v119_v32 = vpop.f32.mrb[1].mxu0  ;;  %v277_v33 = vpop.f32.mrb[0].mxu1 }
  0xe1   :  { %v242_v34 = vadd.f32 %v233_v28, %v119_v32  ;;  %v246_v35 = vadd.f32 %v277_v33, %v237_v29  ;;  %v194_v36 = vpop.f32.mrb[1].mxu1 }
  0xe2   :  { %247 = vst [vmem:[%s382_s3] sm:$0xff] %v241_v31  ;;  %v243_v37 = vadd.f32 %v237_v29, %v194_v36 }
  0xe3   :  { %248 = vst [vmem:[%s382_s3 + $0x8] sm:$0xff] %v242_v34  ;;  %252 = vst [vmem:[%s382_s3 + $0x28] sm:$0xff] %v246_v35  ;;  %v123_v38 = vpop.f32.mrb[2].mxu0 }
  0xe4   :  { %v244_v39 = vadd.f32 %v229_v27, %v123_v38  ;;  %249 = vst [vmem:[%s382_s3 + $0x10] sm:$0xff] %v243_v37  ;;  %v125_v40 = vpop.f32.mrb[3].mxu0 }
  0xe5   :  { %v245_v41 = vadd.f32 %v233_v28, %v125_v40 }
  0xe6   :  { %250 = vst [vmem:[%s382_s3 + $0x18] sm:$0xff] %v244_v39 }
  0xe7   :  { %251 = vst [vmem:[%s382_s3 + $0x20] sm:$0xff] %v245_v41 }

// kernel: gru_model_forward.4
= control target key start
LH: loop header
LB: loop body
LE: loop exit
PB: predicated region body
PF: predicated region fallthrough
CT: control target
= control target key end

     0   :  { %v2447_v3 = vmov 0.0|0.0   ;;  %v2448_v4 = vmov 0.0   ;;  %vm2449_vm0 = vmmov 0   ;;  %s3080_s1 = inlined_call_operand.vmem [shape: f32[128,384], index: 1, kind: input, shape index: {}]   ;;  %s3081_s3 = inlined_call_operand.vmem [shape: f32[2,128], index: 3, kind: input, shape index: {}]   ;;  %s3082_s2 = inlined_call_operand.vmem [shape: f32[1,384], index: 2, kind: input, shape index: {}]   ;;  %s3083_s0 = inlined_call_operand.vmem [shape: f32[8,2,384], index: 0, kind: input, shape index: {}]   ;;  %s3084_s4 = inlined_call_operand.vmem [shape: f32[8,2,128], index: 4, kind: output, shape index: {0}]   ;;  %s3085_s5 = inlined_call_operand.vmem [shape: f32[2,128], index: 5, kind: output, shape index: {1}]  }
   0x1   :  { %v26_v0 = vld [vmem:[%s3080_s1 + $0x8] sm:$0xff]  ;;  %v29_v1 = vld [vmem:[%s3080_s1 + $0x20] sm:$0xff]  ;;  %1948 = vmatprep.subr.bf16.mxu1 %v2447_v3  ;;  %156 = vmatprep.mubr.f32.mxu0 %v2448_v4  ;;  %v28_v6 = vld [vmem:[%s3080_s1 + $0x18] sm:$0xff] }
   0x2   :  { %v25_v2 = vld [vmem:[%s3080_s1] sm:$0xff]  ;;  %v2491_v5 = vpack.c.bf16 %v29_v1, %v26_v0  ;;  %v32_v7 = vld [vmem:[%s3080_s1 + $0x38] sm:$0xff]  ;;  %v35_v8 = vld [vmem:[%s3080_s1 + $0x50] sm:$0xff]  ;;  %1668 = vmatprep.mubr.msk.f32.mxu1 %vm2449_vm0, %v2448_v4 }
   0x3   :  { %v2504_v9 = vpack.c.bf16 %v28_v6, %v25_v2  ;;  %v2506_v10 = vpack.c.bf16 %v35_v8, %v32_v7  ;;  %v31_v11 = vld [vmem:[%s3080_s1 + $0x30] sm:$0xff]  ;;  %v34_v12 = vld [vmem:[%s3080_s1 + $0x48] sm:$0xff]  ;;  %v41_v14 = vld [vmem:[%s3080_s1 + $0x80] sm:$0xff] }
   0x4   :  { %v38_v13 = vld [vmem:[%s3080_s1 + $0x68] sm:$0xff]  ;;  %1917 = vmatprep.subr.bf16.mxu0 %v2491_v5  ;;  %v2522_v15 = vpack.c.bf16 %v34_v12, %v31_v11  ;;  %v37_v17 = vld [vmem:[%s3080_s1 + $0x60] sm:$0xff]  ;;  %v40_v18 = vld [vmem:[%s3080_s1 + $0x78] sm:$0xff] }
   0x5   :  { %1919 = vmatpush1.bf16.msra.mxu0 %v2504_v9  ;;  %v2525_v16 = vpack.c.bf16 %v41_v14, %v38_v13  ;;  %v44_v19 = vld [vmem:[%s3080_s1 + $0x98] sm:$0xff]  ;;  %v47_v20 = vld [vmem:[%s3080_s1 + $0xb0] sm:$0xff]  ;;  %v2540_v21 = vpack.c.bf16 %v40_v18, %v37_v17  ;;  %v46_v24 = vld [vmem:[%s3080_s1 + $0xa8] sm:$0xff] }
   0x6   :  { %1921 = vmatprep.subr.bf16.mxu0 %v2506_v10  ;;  %v2543_v22 = vpack.c.bf16 %v47_v20, %v44_v19  ;;  %v43_v23 = vld [vmem:[%s3080_s1 + $0x90] sm:$0xff]  ;;  %v50_v25 = vld [vmem:[%s3080_s1 + $0xc8] sm:$0xff]  ;;  %v53_v26 = vld [vmem:[%s3080_s1 + $0xe0] sm:$0xff]  ;;  %v77_v19 = vlaneseq }
   0x7   :  { %v27_v27 = vld [vmem:[%s3080_s1 + $0x10] sm:$0xff]  ;;  %v30_v28 = vld [vmem:[%s3080_s1 + $0x28] sm:$0xff]  ;;  %v23_v30 = vld [vmem:[%s3081_s3] sm:$0x3]  ;;  %v2572_v32 = vpack.c.bf16 %v46_v24, %v43_v23  ;;  %v2578_v34 = vpack.c.bf16 %v53_v26, %v50_v25 }
   0x8   :  { %v2563_v29 = vpack.c.bf16 %v30_v28, %v27_v27  ;;  %v33_v31 = vld [vmem:[%s3080_s1 + $0x40] sm:$0xff]  ;;  %24 = vst [vmem:[#allocation2] sm:$0x3] %v23_v30  ;;  %v36_v33 = vld [vmem:[%s3080_s1 + $0x58] sm:$0xff]  ;;  %v59_v39 = vld [vmem:[%s3080_s1 + $0x110] sm:$0xff]  ;;  %v78_v20 = vshrl.u32 %v77_v19, 7 }
   0x9   :  { %1923 = vmatpush1.bf16.msra.mxu0 %v2522_v15  ;;  %v49_v35 = vld [vmem:[%s3080_s1 + $0xc0] sm:$0xff]  ;;  %v52_v36 = vld [vmem:[%s3080_s1 + $0xd8] sm:$0xff]  ;;  %v2590_v38 = vpack.c.bf16 %v36_v33, %v33_v31  ;;  %v39_v40 = vld [vmem:[%s3080_s1 + $0x70] sm:$0xff] }
   0xa   :  { %1925 = vmatprep.subr.bf16.mxu0 %v2525_v16  ;;  %v56_v37 = vld [vmem:[%s3080_s1 + $0xf8] sm:$0xff]  ;;  %1950 = vmatpush3.bf16.msra.mxu1 %v2563_v29  ;;  %v42_v41 = vld [vmem:[%s3080_s1 + $0x88] sm:$0xff]  ;;  %v2603_v42 = vpack.c.bf16 %v52_v36, %v49_v35  ;;  %v55_v44 = vld [vmem:[%s3080_s1 + $0xf0] sm:$0xff]  ;;  %v79_v23 = vsub.s32 0, %v78_v20  ;;  %v83_v25 = vsub.s32 1, %v78_v20 }
   0xb   :  { %1951 = vmatprep.subr.bf16.mxu1 %v2447_v3  ;;  %v2606_v43 = vpack.c.bf16 %v59_v39, %v56_v37  ;;  %v58_v45 = vld [vmem:[%s3080_s1 + $0x108] sm:$0xff]  ;;  %v2618_v47 = vpack.c.bf16 %v42_v41, %v39_v40  ;;  %v65_v48 = vld [vmem:[%s3080_s1 + $0x140] sm:$0xff]  ;;  %v48_v50 = vld [vmem:[%s3080_s1 + $0xb8] sm:$0xff] }
   0xc   :  { %v62_v46 = vld [vmem:[%s3080_s1 + $0x128] sm:$0xff]  ;;  %v45_v49 = vld [vmem:[%s3080_s1 + $0xa0] sm:$0xff]  ;;  %v2631_v51 = vpack.c.bf16 %v58_v45, %v55_v44  ;;  %v64_v54 = vld [vmem:[%s3080_s1 + $0x138] sm:$0xff] }
   0xd   :  { %1927 = vmatpush1.bf16.msra.mxu0 %v2540_v21  ;;  %v2634_v52 = vpack.c.bf16 %v65_v48, %v62_v46  ;;  %v61_v53 = vld [vmem:[%s3080_s1 + $0x120] sm:$0xff]  ;;  %v68_v55 = vld [vmem:[%s3080_s1 + $0x158] sm:$0xff]  ;;  %v2646_v56 = vpack.c.bf16 %v48_v50, %v45_v49  ;;  %v71_v57 = vld [vmem:[%s3080_s1 + $0x170] sm:$0xff]  ;;  %v87_v49 = vsub.s32 2, %v78_v20 }
   0xe   :  { %1929 = vmatprep.subr.bf16.mxu0 %v2543_v22  ;;  %1953 = vmatpush3.bf16.msra.mxu1 %v2590_v38  ;;  %v51_v58 = vld [vmem:[%s3080_s1 + $0xd0] sm:$0xff]  ;;  %v54_v59 = vld [vmem:[%s3080_s1 + $0xe8] sm:$0xff]  ;;  %v2659_v60 = vpack.c.bf16 %v64_v54, %v61_v53  ;;  %v2662_v61 = vpack.c.bf16 %v71_v57, %v68_v55  ;;  %v57_v1 = vld [vmem:[%s3080_s1 + $0x100] sm:$0xff] }
   0xf   :  { %1954 = vmatprep.subr.bf16.mxu1 %v2447_v3  ;;  %v67_v62 = vld [vmem:[%s3080_s1 + $0x150] sm:$0xff]  ;;  %v70_v63 = vld [vmem:[%s3080_s1 + $0x168] sm:$0xff]  ;;  %v2671_v0 = vpack.c.bf16 %v54_v59, %v51_v58  ;;  %v60_v2 = vld [vmem:[%s3080_s1 + $0x118] sm:$0xff] }
  0x10   :  { %v2681_v6 = vpack.c.bf16 %v70_v63, %v67_v62  ;;  %v2685_v7 = vpack.c.bf16 %v60_v2, %v57_v1  ;;  %v63_v8 = vld [vmem:[%s3080_s1 + $0x130] sm:$0xff]  ;;  %v66_v11 = vld [vmem:[%s3080_s1 + $0x148] sm:$0xff]  ;;  %v2695_v12 = vld [vmem:[#allocation2] sm:$0x3] }
  0x11   :  { %1931 = vmatpush1.bf16.msra.mxu0 %v2572_v32  ;;  %v2698_v13 = vpack.c.bf16 %v66_v11, %v63_v8  ;;  %v69_v14 = vld [vmem:[%s3080_s1 + $0x160] sm:$0xff]  ;;  %v72_v17 = vld [vmem:[%s3080_s1 + $0x178] sm:$0xff] }
  0x12   :  { %1933 = vmatprep.subr.bf16.mxu0 %v2578_v34  ;;  %1956 = vmatpush3.bf16.msra.mxu1 %v2618_v47  ;;  %v2712_v18 = vpack.c.bf16 %v72_v17, %v69_v14  ;;  %v73_v24 = vld [vmem:[%s3082_s2] sm:$0x7] }
  0x13   :  { %1957 = vmatprep.subr.bf16.mxu1 %v2447_v3  ;;  %v2754_v26 = vrot.slane %v73_v24, %v79_v23  ;;  %v2756_v27 = vrot.slane %v73_v24, %v83_v25  ;;  %v75_v28 = vld [vmem:[%s3083_s0] sm:$0x3f]  ;;  %v2763_v50 = vrot.slane %v73_v24, %v87_v49 }
  0x14   :  { %v241_v36 = vrot.slane %v75_v28, 2  ;;  %v251_v57 = vrot.slane %v75_v28, 4 }
  0x15   :  { %1935 = vmatpush1.bf16.msra.mxu0 %v2603_v42 }
  0x16   :  { %1937 = vmatprep.subr.bf16.mxu0 %v2606_v43  ;;  %1959 = vmatpush3.bf16.msra.mxu1 %v2646_v56 }
  0x17   :  { %1960 = vmatprep.subr.bf16.mxu1 %v2447_v3 }
  0x19   :  { %1939 = vmatpush1.bf16.msra.mxu0 %v2631_v51 }
  0x1a   :  { %1941 = vmatprep.subr.bf16.mxu0 %v2634_v52  ;;  %1962 = vmatpush3.bf16.msra.mxu1 %v2671_v0 }
  0x1b   :  { %1963 = vmatprep.subr.bf16.mxu1 %v2447_v3 }
  0x1d   :  { %1943 = vmatpush1.bf16.msra.mxu0 %v2659_v60 }
  0x1e   :  { %1945 = vmatprep.subr.bf16.mxu0 %v2662_v61  ;;  %1965 = vmatpush3.bf16.msra.mxu1 %v2685_v7 }
  0x1f   :  { %1966 = vmatprep.subr.bf16.mxu1 %v2447_v3 }
  0x21   :  { %1947 = vmatpush1.bf16.msra.mxu0 %v2681_v6 }
  0x22   :  { %1973 = vmatprep.subr.bf16.mxu0 %v2491_v5  ;;  %1968 = vmatpush3.bf16.msra.mxu1 %v2698_v13 }
  0x23   :  { %1969 = vmatprep.subr.bf16.mxu1 %v2447_v3 }
  0x24   :  { %157 = vmatmul.mubr.f32.vlgmr.msra.gmra.mrb[0].mxu0 %v2695_v12 }
  0x25   :  { %1975 = vmatpush1.bf16.msra.mxu0 %v2504_v9  ;;  %326 = vmatprep.mubr.f32.mxu0 %v2448_v4 }
  0x26   :  { %1977 = vmatprep.subr.bf16.mxu0 %v2506_v10  ;;  %1971 = vmatpush3.bf16.msra.mxu1 %v2712_v18 }
  0x27   :  { %2004 = vmatprep.subr.bf16.mxu1 %v2447_v3 }
  0x29   :  { %1979 = vmatpush1.bf16.msra.mxu0 %v2522_v15  ;;  %1669 = vmatmul.mubr.f32.vlgmr.msra.gmra.mrb[0].mxu1 %v2695_v12 }
  0x2a   :  { %1981 = vmatprep.subr.bf16.mxu0 %v2525_v16  ;;  %2006 = vmatpush3.bf16.msra.mxu1 %v2563_v29 }
  0x2b   :  { %2007 = vmatprep.subr.bf16.mxu1 %v2447_v3  ;;  %1703 = vmatprep.mubr.msk.f32.mxu1 %vm2449_vm0, %v2448_v4 }
  0x2d   :  { %1983 = vmatpush1.bf16.msra.mxu0 %v2540_v21 }
  0x2e   :  { %1985 = vmatprep.subr.bf16.mxu0 %v2543_v22  ;;  %2009 = vmatpush3.bf16.msra.mxu1 %v2590_v38 }
  0x2f   :  { %2010 = vmatprep.subr.bf16.mxu1 %v2447_v3 }
  0x31   :  { %1987 = vmatpush1.bf16.msra.mxu0 %v2572_v32 }
  0x32   :  { %1989 = vmatprep.subr.bf16.mxu0 %v2578_v34  ;;  %2012 = vmatpush3.bf16.msra.mxu1 %v2618_v47 }
  0x33   :  { %2013 = vmatprep.subr.bf16.mxu1 %v2447_v3 }
  0x35   :  { %1991 = vmatpush1.bf16.msra.mxu0 %v2603_v42 }
  0x36   :  { %1993 = vmatprep.subr.bf16.mxu0 %v2606_v43  ;;  %2015 = vmatpush3.bf16.msra.mxu1 %v2646_v56 }
  0x37   :  { %2016 = vmatprep.subr.bf16.mxu1 %v2447_v3 }
  0x39   :  { %1995 = vmatpush1.bf16.msra.mxu0 %v2631_v51 }
  0x3a   :  { %1997 = vmatprep.subr.bf16.mxu0 %v2634_v52  ;;  %2018 = vmatpush3.bf16.msra.mxu1 %v2671_v0 }
  0x3b   :  { %2019 = vmatprep.subr.bf16.mxu1 %v2447_v3 }
  0x3d   :  { %1999 = vmatpush1.bf16.msra.mxu0 %v2659_v60 }
  0x3e   :  { %2001 = vmatprep.subr.bf16.mxu0 %v2662_v61  ;;  %2021 = vmatpush3.bf16.msra.mxu1 %v2685_v7 }
  0x3f   :  { %2022 = vmatprep.subr.bf16.mxu1 %v2447_v3 }
  0x41   :  { %2003 = vmatpush1.bf16.msra.mxu0 %v2681_v6 }
  0x42   :  { %2029 = vmatprep.subr.bf16.mxu0 %v2491_v5  ;;  %2024 = vmatpush3.bf16.msra.mxu1 %v2698_v13 }
  0x43   :  { %2025 = vmatprep.subr.bf16.mxu1 %v2447_v3 }
  0x46   :  { %2027 = vmatpush3.bf16.msra.mxu1 %v2712_v18 }
  0x47   :  { %2060 = vmatprep.subr.bf16.mxu1 %v2447_v3 }
  0xf7   :  { %v158_v30 = vpop.f32.mrb[0].mxu0 }
  0xf8   :  { %v159_v31 = vadd.f32 %v158_v30, %v2754_v26  ;;  %v160_v33 = vpop.f32.mrb[1].mxu0 }
  0xf9   :  { %v161_v35 = vadd.f32 %v160_v33, %v2756_v27 }
  0xfa   :  { %v233_v37 = vadd.f32 %v159_v31, %v75_v28 }
  0xfb   :  { %v243_v40 = vadd.f32 %v241_v36, %v161_v35 }
  0xfc   :  { %v1470_v39 = vmul.f32 -1.442695, %v233_v37  ;;  %v229_v41 = vpop.f32.mrb[0].mxu1 }
  0xfd   :  { %v1471_v44 = vmul.f32 -1.442695, %v243_v40  ;;  %v1670_v45 = vpop.f32.mrb[1].mxu1  ;;  %v230_v55 = vadd.f32 %v229_v41, %v2763_v50 }
  0xfe   :  { %2367 = vpow2.f32 %v1470_v39 }
  0xff   :  { %2369 = vpow2.f32 %v1471_v44 }
 0x108   :  { %v2368_v46 = vpop.eup %2367 }
 0x109   :  { %v237_v48 = vadd.f32 1.0, %v2368_v46  ;;  %v2370_v53 = vpop.eup %2369 }
 0x10a   :  { %v247_v54 = vadd.f32 1.0, %v2370_v53 }
 0x10b   :  { %2371 = vrcp.f32 %v237_v48 }
 0x10c   :  { %2373 = vrcp.f32 %v247_v54 }
 0x115   :  { %v2372_v58 = vpop.eup %2371 }
 0x116   :  { %v250_v59 = vmul.f32 %v2372_v58, %v230_v55  ;;  %v2374_v63 = vpop.eup %2373 }
 0x117   :  { %v255_v1 = vsub.f32 1.0, %v2374_v63  ;;  %v257_v11 = vmul.f32 %v2374_v63, %v2695_v12  ;;  %v1472_v12 = vld [vmem:[%s3083_s0 + $0x6] sm:$0x3f] }
 0x118   :  { %v253_v62 = vadd.f32 %v251_v57, %v250_v59  ;;  %v411_v28 = vrot.slane %v1472_v12, 2  ;;  %v421_v44 = vrot.slane %v1472_v12, 4  ;;  %v1476_v59 = vld [vmem:[%s3083_s0 + $0xc] sm:$0x3f] }
 0x11a   :  { %2375 = vtanh.f32 %v253_v62 }
 0x124   :  { %v2376_v2 = vpop.eup %2375 }
 0x125   :  { %v256_v8 = vmul.f32 %v2376_v2, %v255_v1 }
 0x127   :  { %v2767_v14 = vadd.f32 %v257_v11, %v256_v8 }
 0x129   :  { %259 = vst [vmem:[%s3084_s4] sm:$0x3] %v2767_v14  ;;  %327 = vmatmul.mubr.f32.vlgmr.msra.gmra.mrb[2].mxu0 %v2767_v14  ;;  %1704 = vmatmul.mubr.f32.vlgmr.msra.gmra.mrb[2].mxu1 %v2767_v14 }
 0x12a   :  { %2031 = vmatpush1.bf16.msra.mxu0 %v2504_v9  ;;  %2062 = vmatpush3.bf16.msra.mxu1 %v2563_v29 }
 0x12b   :  { %2033 = vmatprep.subr.bf16.mxu0 %v2506_v10  ;;  %2063 = vmatprep.subr.bf16.mxu1 %v2447_v3 }
 0x12c   :  { %497 = vmatprep.mubr.f32.mxu0 %v2448_v4  ;;  %1738 = vmatprep.mubr.msk.f32.mxu1 %vm2449_vm0, %v2448_v4 }
 0x12e   :  { %2035 = vmatpush1.bf16.msra.mxu0 %v2522_v15  ;;  %2065 = vmatpush3.bf16.msra.mxu1 %v2590_v38 }
 0x12f   :  { %2037 = vmatprep.subr.bf16.mxu0 %v2525_v16  ;;  %2066 = vmatprep.subr.bf16.mxu1 %v2447_v3 }
 0x132   :  { %2039 = vmatpush1.bf16.msra.mxu0 %v2540_v21  ;;  %2068 = vmatpush3.bf16.msra.mxu1 %v2618_v47 }
 0x133   :  { %2041 = vmatprep.subr.bf16.mxu0 %v2543_v22  ;;  %2069 = vmatprep.subr.bf16.mxu1 %v2447_v3 }
 0x136   :  { %2043 = vmatpush1.bf16.msra.mxu0 %v2572_v32  ;;  %2071 = vmatpush3.bf16.msra.mxu1 %v2646_v56 }
 0x137   :  { %2045 = vmatprep.subr.bf16.mxu0 %v2578_v34  ;;  %2072 = vmatprep.subr.bf16.mxu1 %v2447_v3 }
 0x13a   :  { %2047 = vmatpush1.bf16.msra.mxu0 %v2603_v42  ;;  %2074 = vmatpush3.bf16.msra.mxu1 %v2671_v0 }
 0x13b   :  { %2049 = vmatprep.subr.bf16.mxu0 %v2606_v43  ;;  %2075 = vmatprep.subr.bf16.mxu1 %v2447_v3 }
 0x13e   :  { %2051 = vmatpush1.bf16.msra.mxu0 %v2631_v51  ;;  %2077 = vmatpush3.bf16.msra.mxu1 %v2685_v7 }
 0x13f   :  { %2053 = vmatprep.subr.bf16.mxu0 %v2634_v52  ;;  %2078 = vmatprep.subr.bf16.mxu1 %v2447_v3 }
 0x142   :  { %2055 = vmatpush1.bf16.msra.mxu0 %v2659_v60  ;;  %2080 = vmatpush3.bf16.msra.mxu1 %v2698_v13 }
 0x143   :  { %2057 = vmatprep.subr.bf16.mxu0 %v2662_v61  ;;  %2081 = vmatprep.subr.bf16.mxu1 %v2447_v3 }
 0x146   :  { %2059 = vmatpush1.bf16.msra.mxu0 %v2681_v6  ;;  %2083 = vmatpush3.bf16.msra.mxu1 %v2712_v18 }
 0x147   :  { %2085 = vmatprep.subr.bf16.mxu0 %v2491_v5  ;;  %2116 = vmatprep.subr.bf16.mxu1 %v2447_v3 }
 0x1fc   :  { %v328_v17 = vpop.f32.mrb[2].mxu0  ;;  %v399_v19 = vpop.f32.mrb[2].mxu1 }
 0x1fd   :  { %v329_v20 = vadd.f32 %v328_v17, %v2754_v26  ;;  %v330_v23 = vpop.f32.mrb[3].mxu0  ;;  %v1705_v24 = vpop.f32.mrb[3].mxu1  ;;  %v400_v41 = vadd.f32 %v399_v19, %v2763_v50 }
 0x1fe   :  { %v331_v25 = vadd.f32 %v330_v23, %v2756_v27 }
 0x1ff   :  { %v403_v30 = vadd.f32 %v1472_v12, %v329_v20 }
 0x200   :  { %v413_v33 = vadd.f32 %v411_v28, %v331_v25 }
 0x201   :  { %v1473_v31 = vmul.f32 -1.442695, %v403_v30 }
 0x202   :  { %v1474_v35 = vmul.f32 -1.442695, %v413_v33 }
 0x203   :  { %2377 = vpow2.f32 %v1473_v31  ;;  %v592_v31 = vrot.slane %v1476_v59, 4 }
 0x204   :  { %2379 = vpow2.f32 %v1474_v35 }
 0x20d   :  { %v2378_v36 = vpop.eup %2377 }
 0x20e   :  { %v407_v37 = vadd.f32 1.0, %v2378_v36  ;;  %v2380_v39 = vpop.eup %2379 }
 0x20f   :  { %v417_v40 = vadd.f32 1.0, %v2380_v39 }
 0x210   :  { %2381 = vrcp.f32 %v407_v37 }
 0x211   :  { %2383 = vrcp.f32 %v417_v40 }
 0x21a   :  { %v2382_v45 = vpop.eup %2381 }
 0x21b   :  { %v420_v46 = vmul.f32 %v2382_v45, %v400_v41  ;;  %v2384_v49 = vpop.eup %2383 }
 0x21c   :  { %v425_v53 = vsub.f32 1.0, %v2384_v49  ;;  %v427_v57 = vmul.f32 %v2384_v49, %v2767_v14  ;;  %v582_v14 = vrot.slane %v1476_v59, 2 }
 0x21d   :  { %v423_v48 = vadd.f32 %v421_v44, %v420_v46  ;;  %v1480_v46 = vld [vmem:[%s3083_s0 + $0x12] sm:$0x3f] }
 0x21f   :  { %2385 = vtanh.f32 %v423_v48 }
 0x229   :  { %v2386_v54 = vpop.eup %2385 }
 0x22a   :  { %v426_v55 = vmul.f32 %v2386_v54, %v425_v53 }
 0x22c   :  { %v2817_v58 = vadd.f32 %v427_v57, %v426_v55 }
 0x22e   :  { %1475 = vst [vmem:[%s3084_s4 + $0x2] sm:$0x3] %v2817_v58  ;;  %498 = vmatmul.mubr.f32.vlgmr.msra.gmra.mrb[4].mxu0 %v2817_v58  ;;  %1739 = vmatmul.mubr.f32.vlgmr.msra.gmra.mrb[4].mxu1 %v2817_v58 }
 0x22f   :  { %2087 = vmatpush1.bf16.msra.mxu0 %v2504_v9  ;;  %2118 = vmatpush3.bf16.msra.mxu1 %v2563_v29 }
 0x230   :  { %2089 = vmatprep.subr.bf16.mxu0 %v2506_v10  ;;  %2119 = vmatprep.subr.bf16.mxu1 %v2447_v3 }
 0x231   :  { %668 = vmatprep.mubr.f32.mxu0 %v2448_v4  ;;  %1773 = vmatprep.mubr.msk.f32.mxu1 %vm2449_vm0, %v2448_v4 }
 0x233   :  { %2091 = vmatpush1.bf16.msra.mxu0 %v2522_v15  ;;  %2121 = vmatpush3.bf16.msra.mxu1 %v2590_v38 }
 0x234   :  { %2093 = vmatprep.subr.bf16.mxu0 %v2525_v16  ;;  %2122 = vmatprep.subr.bf16.mxu1 %v2447_v3 }
 0x237   :  { %2095 = vmatpush1.bf16.msra.mxu0 %v2540_v21  ;;  %2124 = vmatpush3.bf16.msra.mxu1 %v2618_v47 }
 0x238   :  { %2097 = vmatprep.subr.bf16.mxu0 %v2543_v22  ;;  %2125 = vmatprep.subr.bf16.mxu1 %v2447_v3 }
 0x23b   :  { %2099 = vmatpush1.bf16.msra.mxu0 %v2572_v32  ;;  %2127 = vmatpush3.bf16.msra.mxu1 %v2646_v56 }
 0x23c   :  { %2101 = vmatprep.subr.bf16.mxu0 %v2578_v34  ;;  %2128 = vmatprep.subr.bf16.mxu1 %v2447_v3 }
 0x23f   :  { %2103 = vmatpush1.bf16.msra.mxu0 %v2603_v42  ;;  %2130 = vmatpush3.bf16.msra.mxu1 %v2671_v0 }
 0x240   :  { %2105 = vmatprep.subr.bf16.mxu0 %v2606_v43  ;;  %2131 = vmatprep.subr.bf16.mxu1 %v2447_v3 }
 0x243   :  { %2107 = vmatpush1.bf16.msra.mxu0 %v2631_v51  ;;  %2133 = vmatpush3.bf16.msra.mxu1 %v2685_v7 }
 0x244   :  { %2109 = vmatprep.subr.bf16.mxu0 %v2634_v52  ;;  %2134 = vmatprep.subr.bf16.mxu1 %v2447_v3 }
 0x247   :  { %2111 = vmatpush1.bf16.msra.mxu0 %v2659_v60  ;;  %2136 = vmatpush3.bf16.msra.mxu1 %v2698_v13 }
 0x248   :  { %2113 = vmatprep.subr.bf16.mxu0 %v2662_v61  ;;  %2137 = vmatprep.subr.bf16.mxu1 %v2447_v3 }
 0x24b   :  { %2115 = vmatpush1.bf16.msra.mxu0 %v2681_v6  ;;  %2139 = vmatpush3.bf16.msra.mxu1 %v2712_v18 }
 0x24c   :  { %2141 = vmatprep.subr.bf16.mxu0 %v2491_v5  ;;  %2172 = vmatprep.subr.bf16.mxu1 %v2447_v3 }
 0x301   :  { %v499_v62 = vpop.f32.mrb[4].mxu0  ;;  %v570_v63 = vpop.f32.mrb[4].mxu1 }
 0x302   :  { %v500_v1 = vadd.f32 %v499_v62, %v2754_v26  ;;  %v501_v2 = vpop.f32.mrb[5].mxu0  ;;  %v1740_v8 = vpop.f32.mrb[5].mxu1  ;;  %v571_v30 = vadd.f32 %v570_v63, %v2763_v50 }
 0x303   :  { %v502_v11 = vadd.f32 %v501_v2, %v2756_v27 }
 0x304   :  { %v574_v12 = vadd.f32 %v1476_v59, %v500_v1 }
 0x305   :  { %v584_v19 = vadd.f32 %v582_v14, %v502_v11 }
 0x306   :  { %v1477_v17 = vmul.f32 -1.442695, %v574_v12 }
 0x307   :  { %v1478_v20 = vmul.f32 -1.442695, %v584_v19 }
 0x308   :  { %2387 = vpow2.f32 %v1477_v17  ;;  %v763_v17 = vrot.slane %v1480_v46, 4 }
 0x309   :  { %2389 = vpow2.f32 %v1478_v20 }
 0x312   :  { %v2388_v23 = vpop.eup %2387 }
 0x313   :  { %v578_v24 = vadd.f32 1.0, %v2388_v23  ;;  %v2390_v25 = vpop.eup %2389 }
 0x314   :  { %v588_v28 = vadd.f32 1.0, %v2390_v25 }
 0x315   :  { %2391 = vrcp.f32 %v578_v24 }
 0x316   :  { %2393 = vrcp.f32 %v588_v28 }
 0x31f   :  { %v2392_v33 = vpop.eup %2391 }
 0x320   :  { %v591_v35 = vmul.f32 %v2392_v33, %v571_v30  ;;  %v2394_v37 = vpop.eup %2393 }
 0x321   :  { %v596_v39 = vsub.f32 1.0, %v2394_v37  ;;  %v598_v44 = vmul.f32 %v2394_v37, %v2817_v58  ;;  %v753_v58 = vrot.slane %v1480_v46, 2 }
 0x322   :  { %v594_v36 = vadd.f32 %v592_v31, %v591_v35  ;;  %v1484_v35 = vld [vmem:[%s3083_s0 + $0x18] sm:$0x3f] }
 0x324   :  { %2395 = vtanh.f32 %v594_v36 }
 0x32e   :  { %v2396_v40 = vpop.eup %2395 }
 0x32f   :  { %v597_v41 = vmul.f32 %v2396_v40, %v596_v39 }
 0x331   :  { %v2867_v45 = vadd.f32 %v598_v44, %v597_v41 }
 0x333   :  { %1479 = vst [vmem:[%s3084_s4 + $0x4] sm:$0x3] %v2867_v45  ;;  %669 = vmatmul.mubr.f32.vlgmr.msra.gmra.mrb[6].mxu0 %v2867_v45  ;;  %1774 = vmatmul.mubr.f32.vlgmr.msra.gmra.mrb[6].mxu1 %v2867_v45 }
 0x334   :  { %2143 = vmatpush1.bf16.msra.mxu0 %v2504_v9  ;;  %2174 = vmatpush3.bf16.msra.mxu1 %v2563_v29 }
 0x335   :  { %2145 = vmatprep.subr.bf16.mxu0 %v2506_v10  ;;  %2175 = vmatprep.subr.bf16.mxu1 %v2447_v3 }
 0x336   :  { %839 = vmatprep.mubr.f32.mxu0 %v2448_v4  ;;  %1808 = vmatprep.mubr.msk.f32.mxu1 %vm2449_vm0, %v2448_v4 }
 0x338   :  { %2147 = vmatpush1.bf16.msra.mxu0 %v2522_v15  ;;  %2177 = vmatpush3.bf16.msra.mxu1 %v2590_v38 }
 0x339   :  { %2149 = vmatprep.subr.bf16.mxu0 %v2525_v16  ;;  %2178 = vmatprep.subr.bf16.mxu1 %v2447_v3 }
 0x33c   :  { %2151 = vmatpush1.bf16.msra.mxu0 %v2540_v21  ;;  %2180 = vmatpush3.bf16.msra.mxu1 %v2618_v47 }
 0x33d   :  { %2153 = vmatprep.subr.bf16.mxu0 %v2543_v22  ;;  %2181 = vmatprep.subr.bf16.mxu1 %v2447_v3 }
 0x340   :  { %2155 = vmatpush1.bf16.msra.mxu0 %v2572_v32  ;;  %2183 = vmatpush3.bf16.msra.mxu1 %v2646_v56 }
 0x341   :  { %2157 = vmatprep.subr.bf16.mxu0 %v2578_v34  ;;  %2184 = vmatprep.subr.bf16.mxu1 %v2447_v3 }
 0x344   :  { %2159 = vmatpush1.bf16.msra.mxu0 %v2603_v42  ;;  %2186 = vmatpush3.bf16.msra.mxu1 %v2671_v0 }
 0x345   :  { %2161 = vmatprep.subr.bf16.mxu0 %v2606_v43  ;;  %2187 = vmatprep.subr.bf16.mxu1 %v2447_v3 }
 0x348   :  { %2163 = vmatpush1.bf16.msra.mxu0 %v2631_v51  ;;  %2189 = vmatpush3.bf16.msra.mxu1 %v2685_v7 }
 0x349   :  { %2165 = vmatprep.subr.bf16.mxu0 %v2634_v52  ;;  %2190 = vmatprep.subr.bf16.mxu1 %v2447_v3 }
 0x34c   :  { %2167 = vmatpush1.bf16.msra.mxu0 %v2659_v60  ;;  %2192 = vmatpush3.bf16.msra.mxu1 %v2698_v13 }
 0x34d   :  { %2169 = vmatprep.subr.bf16.mxu0 %v2662_v61  ;;  %2193 = vmatprep.subr.bf16.mxu1 %v2447_v3 }
 0x350   :  { %2171 = vmatpush1.bf16.msra.mxu0 %v2681_v6  ;;  %2195 = vmatpush3.bf16.msra.mxu1 %v2712_v18 }
 0x351   :  { %2197 = vmatprep.subr.bf16.mxu0 %v2491_v5  ;;  %2228 = vmatprep.subr.bf16.mxu1 %v2447_v3 }
 0x406   :  { %v670_v48 = vpop.f32.mrb[6].mxu0  ;;  %v741_v49 = vpop.f32.mrb[6].mxu1 }
 0x407   :  { %v671_v53 = vadd.f32 %v670_v48, %v2754_v26  ;;  %v672_v54 = vpop.f32.mrb[7].mxu0  ;;  %v1775_v55 = vpop.f32.mrb[7].mxu1  ;;  %v742_v12 = vadd.f32 %v741_v49, %v2763_v50 }
 0x408   :  { %v673_v57 = vadd.f32 %v672_v54, %v2756_v27 }
 0x409   :  { %v745_v59 = vadd.f32 %v1480_v46, %v671_v53 }
 0x40a   :  { %v755_v63 = vadd.f32 %v753_v58, %v673_v57 }
 0x40b   :  { %v1481_v62 = vmul.f32 -1.442695, %v745_v59 }
 0x40c   :  { %v1482_v1 = vmul.f32 -1.442695, %v755_v63 }
 0x40d   :  { %2397 = vpow2.f32 %v1481_v62  ;;  %v934_v62 = vrot.slane %v1484_v35, 4 }
 0x40e   :  { %2399 = vpow2.f32 %v1482_v1 }
 0x417   :  { %v2398_v2 = vpop.eup %2397 }
 0x418   :  { %v749_v8 = vadd.f32 1.0, %v2398_v2  ;;  %v2400_v11 = vpop.eup %2399 }
 0x419   :  { %v759_v14 = vadd.f32 1.0, %v2400_v11 }
 0x41a   :  { %2401 = vrcp.f32 %v749_v8 }
 0x41b   :  { %2403 = vrcp.f32 %v759_v14 }
 0x424   :  { %v2402_v19 = vpop.eup %2401 }
 0x425   :  { %v762_v20 = vmul.f32 %v2402_v19, %v742_v12  ;;  %v2404_v24 = vpop.eup %2403 }
 0x426   :  { %v767_v25 = vsub.f32 1.0, %v2404_v24  ;;  %v769_v31 = vmul.f32 %v2404_v24, %v2867_v45  ;;  %v924_v45 = vrot.slane %v1484_v35, 2 }
 0x427   :  { %v765_v23 = vadd.f32 %v763_v17, %v762_v20  ;;  %v1488_v20 = vld [vmem:[%s3083_s0 + $0x1e] sm:$0x3f] }
 0x429   :  { %2405 = vtanh.f32 %v765_v23 }
 0x433   :  { %v2406_v28 = vpop.eup %2405 }
 0x434   :  { %v768_v30 = vmul.f32 %v2406_v28, %v767_v25 }
 0x436   :  { %v2917_v33 = vadd.f32 %v769_v31, %v768_v30 }
 0x438   :  { %1483 = vst [vmem:[%s3084_s4 + $0x6] sm:$0x3] %v2917_v33  ;;  %840 = vmatmul.mubr.f32.vlgmr.msra.gmra.mrb[8].mxu0 %v2917_v33  ;;  %1809 = vmatmul.mubr.f32.vlgmr.msra.gmra.mrb[8].mxu1 %v2917_v33 }
 0x439   :  { %2199 = vmatpush1.bf16.msra.mxu0 %v2504_v9  ;;  %2230 = vmatpush3.bf16.msra.mxu1 %v2563_v29 }
 0x43a   :  { %2201 = vmatprep.subr.bf16.mxu0 %v2506_v10  ;;  %2231 = vmatprep.subr.bf16.mxu1 %v2447_v3 }
 0x43b   :  { %1010 = vmatprep.mubr.f32.mxu0 %v2448_v4  ;;  %1843 = vmatprep.mubr.msk.f32.mxu1 %vm2449_vm0, %v2448_v4 }
 0x43d   :  { %2203 = vmatpush1.bf16.msra.mxu0 %v2522_v15  ;;  %2233 = vmatpush3.bf16.msra.mxu1 %v2590_v38 }
 0x43e   :  { %2205 = vmatprep.subr.bf16.mxu0 %v2525_v16  ;;  %2234 = vmatprep.subr.bf16.mxu1 %v2447_v3 }
 0x441   :  { %2207 = vmatpush1.bf16.msra.mxu0 %v2540_v21  ;;  %2236 = vmatpush3.bf16.msra.mxu1 %v2618_v47 }
 0x442   :  { %2209 = vmatprep.subr.bf16.mxu0 %v2543_v22  ;;  %2237 = vmatprep.subr.bf16.mxu1 %v2447_v3 }
 0x445   :  { %2211 = vmatpush1.bf16.msra.mxu0 %v2572_v32  ;;  %2239 = vmatpush3.bf16.msra.mxu1 %v2646_v56 }
 0x446   :  { %2213 = vmatprep.subr.bf16.mxu0 %v2578_v34  ;;  %2240 = vmatprep.subr.bf16.mxu1 %v2447_v3 }
 0x449   :  { %2215 = vmatpush1.bf16.msra.mxu0 %v2603_v42  ;;  %2242 = vmatpush3.bf16.msra.mxu1 %v2671_v0 }
 0x44a   :  { %2217 = vmatprep.subr.bf16.mxu0 %v2606_v43  ;;  %2243 = vmatprep.subr.bf16.mxu1 %v2447_v3 }
 0x44d   :  { %2219 = vmatpush1.bf16.msra.mxu0 %v2631_v51  ;;  %2245 = vmatpush3.bf16.msra.mxu1 %v2685_v7 }
 0x44e   :  { %2221 = vmatprep.subr.bf16.mxu0 %v2634_v52  ;;  %2246 = vmatprep.subr.bf16.mxu1 %v2447_v3 }
 0x451   :  { %2223 = vmatpush1.bf16.msra.mxu0 %v2659_v60  ;;  %2248 = vmatpush3.bf16.msra.mxu1 %v2698_v13 }
 0x452   :  { %2225 = vmatprep.subr.bf16.mxu0 %v2662_v61  ;;  %2249 = vmatprep.subr.bf16.mxu1 %v2447_v3 }
 0x455   :  { %2227 = vmatpush1.bf16.msra.mxu0 %v2681_v6  ;;  %2251 = vmatpush3.bf16.msra.mxu1 %v2712_v18 }
 0x456   :  { %2253 = vmatprep.subr.bf16.mxu0 %v2491_v5  ;;  %2284 = vmatprep.subr.bf16.mxu1 %v2447_v3 }
 0x50b   :  { %v841_v36 = vpop.f32.mrb[8].mxu0  ;;  %v912_v37 = vpop.f32.mrb[8].mxu1 }
 0x50c   :  { %v842_v39 = vadd.f32 %v841_v36, %v2754_v26  ;;  %v843_v40 = vpop.f32.mrb[9].mxu0  ;;  %v1810_v41 = vpop.f32.mrb[9].mxu1  ;;  %v913_v59 = vadd.f32 %v912_v37, %v2763_v50 }
 0x50d   :  { %v844_v44 = vadd.f32 %v843_v40, %v2756_v27 }
 0x50e   :  { %v916_v46 = vadd.f32 %v1484_v35, %v842_v39 }
 0x50f   :  { %v926_v49 = vadd.f32 %v924_v45, %v844_v44 }
 0x510   :  { %v1485_v48 = vmul.f32 -1.442695, %v916_v46  ;;  %v1105_v46 = vrot.slane %v1488_v20, 4 }
 0x511   :  { %v1486_v53 = vmul.f32 -1.442695, %v926_v49 }
 0x512   :  { %2407 = vpow2.f32 %v1485_v48 }
 0x513   :  { %2409 = vpow2.f32 %v1486_v53 }
 0x51c   :  { %v2408_v54 = vpop.eup %2407 }
 0x51d   :  { %v920_v55 = vadd.f32 1.0, %v2408_v54  ;;  %v2410_v57 = vpop.eup %2409 }
 0x51e   :  { %v930_v58 = vadd.f32 1.0, %v2410_v57 }
 0x51f   :  { %2411 = vrcp.f32 %v920_v55 }
 0x520   :  { %2413 = vrcp.f32 %v930_v58 }
 0x529   :  { %v2412_v63 = vpop.eup %2411 }
 0x52a   :  { %v933_v1 = vmul.f32 %v2412_v63, %v913_v59  ;;  %v2414_v8 = vpop.eup %2413 }
 0x52b   :  { %v938_v11 = vsub.f32 1.0, %v2414_v8  ;;  %v940_v17 = vmul.f32 %v2414_v8, %v2917_v33  ;;  %v1095_v33 = vrot.slane %v1488_v20, 2 }
 0x52c   :  { %v936_v2 = vadd.f32 %v934_v62, %v933_v1 }
 0x52e   :  { %2415 = vtanh.f32 %v936_v2  ;;  %v1496_v2 = vld [vmem:[%s3083_s0 + $0x2a] sm:$0x3f] }
 0x538   :  { %v2416_v14 = vpop.eup %2415 }
 0x539   :  { %v939_v12 = vmul.f32 %v2416_v14, %v938_v11 }
 0x53b   :  { %v2967_v19 = vadd.f32 %v940_v17, %v939_v12 }
 0x53d   :  { %1487 = vst [vmem:[%s3084_s4 + $0x8] sm:$0x3] %v2967_v19  ;;  %1011 = vmatmul.mubr.f32.vlgmr.msra.gmra.mrb[10].mxu0 %v2967_v19  ;;  %1844 = vmatmul.mubr.f32.vlgmr.msra.gmra.mrb[10].mxu1 %v2967_v19 }
 0x53e   :  { %2255 = vmatpush1.bf16.msra.mxu0 %v2504_v9  ;;  %2286 = vmatpush3.bf16.msra.mxu1 %v2563_v29 }
 0x53f   :  { %2257 = vmatprep.subr.bf16.mxu0 %v2506_v10  ;;  %2287 = vmatprep.subr.bf16.mxu1 %v2447_v3 }
 0x540   :  { %1181 = vmatprep.mubr.f32.mxu0 %v2448_v4  ;;  %1878 = vmatprep.mubr.msk.f32.mxu1 %vm2449_vm0, %v2448_v4 }
 0x542   :  { %2259 = vmatpush1.bf16.msra.mxu0 %v2522_v15  ;;  %2289 = vmatpush3.bf16.msra.mxu1 %v2590_v38 }
 0x543   :  { %2261 = vmatprep.subr.bf16.mxu0 %v2525_v16  ;;  %2290 = vmatprep.subr.bf16.mxu1 %v2447_v3 }
 0x546   :  { %2263 = vmatpush1.bf16.msra.mxu0 %v2540_v21  ;;  %2292 = vmatpush3.bf16.msra.mxu1 %v2618_v47 }
 0x547   :  { %2265 = vmatprep.subr.bf16.mxu0 %v2543_v22  ;;  %2293 = vmatprep.subr.bf16.mxu1 %v2447_v3 }
 0x54a   :  { %2267 = vmatpush1.bf16.msra.mxu0 %v2572_v32  ;;  %2295 = vmatpush3.bf16.msra.mxu1 %v2646_v56 }
 0x54b   :  { %2269 = vmatprep.subr.bf16.mxu0 %v2578_v34  ;;  %2296 = vmatprep.subr.bf16.mxu1 %v2447_v3 }
 0x54e   :  { %2271 = vmatpush1.bf16.msra.mxu0 %v2603_v42  ;;  %2298 = vmatpush3.bf16.msra.mxu1 %v2671_v0 }
 0x54f   :  { %2273 = vmatprep.subr.bf16.mxu0 %v2606_v43  ;;  %2299 = vmatprep.subr.bf16.mxu1 %v2447_v3 }
 0x552   :  { %2275 = vmatpush1.bf16.msra.mxu0 %v2631_v51  ;;  %2301 = vmatpush3.bf16.msra.mxu1 %v2685_v7 }
 0x553   :  { %2277 = vmatprep.subr.bf16.mxu0 %v2634_v52  ;;  %2302 = vmatprep.subr.bf16.mxu1 %v2447_v3 }
 0x556   :  { %2279 = vmatpush1.bf16.msra.mxu0 %v2659_v60  ;;  %2304 = vmatpush3.bf16.msra.mxu1 %v2698_v13 }
 0x557   :  { %2281 = vmatprep.subr.bf16.mxu0 %v2662_v61  ;;  %2305 = vmatprep.subr.bf16.mxu1 %v2447_v3 }
 0x55a   :  { %2283 = vmatpush1.bf16.msra.mxu0 %v2681_v6  ;;  %2307 = vmatpush3.bf16.msra.mxu1 %v2712_v18 }
 0x55b   :  { %2309 = vmatprep.subr.bf16.mxu0 %v2491_v5  ;;  %2340 = vmatprep.subr.bf16.mxu1 %v2447_v3 }
 0x610   :  { %v1012_v23 = vpop.f32.mrb[10].mxu0  ;;  %v1083_v24 = vpop.f32.mrb[10].mxu1 }
 0x611   :  { %v1013_v25 = vadd.f32 %v1012_v23, %v2754_v26  ;;  %v1014_v28 = vpop.f32.mrb[11].mxu0  ;;  %v1845_v30 = vpop.f32.mrb[11].mxu1  ;;  %v1084_v45 = vadd.f32 %v1083_v24, %v2763_v50 }
 0x612   :  { %v1015_v31 = vadd.f32 %v1014_v28, %v2756_v27 }
 0x613   :  { %v1087_v35 = vadd.f32 %v1488_v20, %v1013_v25  ;;  %v1437_v20 = vrot.slane %v1496_v2, 2 }
 0x614   :  { %v1097_v37 = vadd.f32 %v1095_v33, %v1015_v31 }
 0x615   :  { %v1489_v36 = vmul.f32 -1.442695, %v1087_v35 }
 0x616   :  { %v1490_v5 = vmul.f32 -1.442695, %v1097_v37  ;;  %v1447_v37 = vrot.slane %v1496_v2, 4 }
 0x617   :  { %2417 = vpow2.f32 %v1489_v36 }
 0x618   :  { %2419 = vpow2.f32 %v1490_v5 }
 0x621   :  { %v2418_v39 = vpop.eup %2417 }
 0x622   :  { %v1091_v40 = vadd.f32 1.0, %v2418_v39  ;;  %v2420_v41 = vpop.eup %2419 }
 0x623   :  { %v1101_v44 = vadd.f32 1.0, %v2420_v41 }
 0x624   :  { %2421 = vrcp.f32 %v1091_v40 }
 0x625   :  { %2423 = vrcp.f32 %v1101_v44 }
 0x62e   :  { %v2422_v48 = vpop.eup %2421 }
 0x62f   :  { %v1104_v49 = vmul.f32 %v2422_v48, %v1084_v45  ;;  %v2424_v54 = vpop.eup %2423 }
 0x630   :  { %v1109_v55 = vsub.f32 1.0, %v2424_v54  ;;  %v1111_v59 = vmul.f32 %v2424_v54, %v2967_v19 }
 0x631   :  { %v1107_v53 = vadd.f32 %v1105_v46, %v1104_v49 }
 0x633   :  { %2425 = vtanh.f32 %v1107_v53 }
 0x63d   :  { %v2426_v57 = vpop.eup %2425 }
 0x63e   :  { %v1110_v58 = vmul.f32 %v2426_v57, %v1109_v55 }
 0x640   :  { %v3017_v62 = vadd.f32 %v1111_v59, %v1110_v58 }
 0x642   :  { %1491 = vst [vmem:[%s3084_s4 + $0xa] sm:$0x3] %v3017_v62  ;;  %1182 = vmatmul.mubr.f32.vlgmr.msra.gmra.mrb[12].mxu0 %v3017_v62  ;;  %1879 = vmatmul.mubr.f32.vlgmr.msra.gmra.mrb[12].mxu1 %v3017_v62 }
 0x643   :  { %2311 = vmatpush1.bf16.msra.mxu0 %v2504_v9  ;;  %2342 = vmatpush3.bf16.msra.mxu1 %v2563_v29 }
 0x644   :  { %2313 = vmatprep.subr.bf16.mxu0 %v2506_v10  ;;  %2343 = vmatprep.subr.bf16.mxu1 %v2447_v3 }
 0x645   :  { %1352 = vmatprep.mubr.f32.mxu0 %v2448_v4  ;;  %1913 = vmatprep.mubr.msk.f32.mxu1 %vm2449_vm0, %v2448_v4  ;;  %v1492_v4 = vld [vmem:[%s3083_s0 + $0x24] sm:$0x3f] }
 0x646   :  { %v1266_v29 = vrot.slane %v1492_v4, 2 }
 0x647   :  { %2315 = vmatpush1.bf16.msra.mxu0 %v2522_v15  ;;  %2345 = vmatpush3.bf16.msra.mxu1 %v2590_v38 }
 0x648   :  { %2317 = vmatprep.subr.bf16.mxu0 %v2525_v16  ;;  %2346 = vmatprep.subr.bf16.mxu1 %v2447_v3 }
 0x64b   :  { %2319 = vmatpush1.bf16.msra.mxu0 %v2540_v21  ;;  %2348 = vmatpush3.bf16.msra.mxu1 %v2618_v47 }
 0x64c   :  { %2321 = vmatprep.subr.bf16.mxu0 %v2543_v22  ;;  %2349 = vmatprep.subr.bf16.mxu1 %v2447_v3 }
 0x64f   :  { %2323 = vmatpush1.bf16.msra.mxu0 %v2572_v32  ;;  %2351 = vmatpush3.bf16.msra.mxu1 %v2646_v56  ;;  %v1276_v56 = vrot.slane %v1492_v4, 4 }
 0x650   :  { %2325 = vmatprep.subr.bf16.mxu0 %v2578_v34  ;;  %2352 = vmatprep.subr.bf16.mxu1 %v2447_v3 }
 0x653   :  { %2327 = vmatpush1.bf16.msra.mxu0 %v2603_v42  ;;  %2354 = vmatpush3.bf16.msra.mxu1 %v2671_v0 }
 0x654   :  { %2329 = vmatprep.subr.bf16.mxu0 %v2606_v43  ;;  %2355 = vmatprep.subr.bf16.mxu1 %v2447_v3 }
 0x657   :  { %2331 = vmatpush1.bf16.msra.mxu0 %v2631_v51  ;;  %2357 = vmatpush3.bf16.msra.mxu1 %v2685_v7 }
 0x658   :  { %2333 = vmatprep.subr.bf16.mxu0 %v2634_v52  ;;  %2358 = vmatprep.subr.bf16.mxu1 %v2447_v3 }
 0x65b   :  { %2335 = vmatpush1.bf16.msra.mxu0 %v2659_v60  ;;  %2360 = vmatpush3.bf16.msra.mxu1 %v2698_v13 }
 0x65c   :  { %2337 = vmatprep.subr.bf16.mxu0 %v2662_v61  ;;  %2361 = vmatprep.subr.bf16.mxu1 %v2447_v3 }
 0x65f   :  { %2339 = vmatpush1.bf16.msra.mxu0 %v2681_v6  ;;  %2363 = vmatpush3.bf16.msra.mxu1 %v2712_v18 }
 0x715   :  { %v1183_v9 = vpop.f32.mrb[12].mxu0  ;;  %v1254_v10 = vpop.f32.mrb[12].mxu1 }
 0x716   :  { %v1184_v15 = vadd.f32 %v1183_v9, %v2754_v26  ;;  %v1185_v16 = vpop.f32.mrb[13].mxu0  ;;  %v1880_v21 = vpop.f32.mrb[13].mxu1  ;;  %v1255_v52 = vadd.f32 %v1254_v10, %v2763_v50 }
 0x717   :  { %v1186_v22 = vadd.f32 %v1185_v16, %v2756_v27 }
 0x718   :  { %v1258_v32 = vadd.f32 %v1492_v4, %v1184_v15 }
 0x719   :  { %v1268_v3 = vadd.f32 %v1266_v29, %v1186_v22 }
 0x71a   :  { %v1493_v34 = vmul.f32 -1.442695, %v1258_v32 }
 0x71b   :  { %v1494_v38 = vmul.f32 -1.442695, %v1268_v3 }
 0x71c   :  { %2427 = vpow2.f32 %v1493_v34 }
 0x71d   :  { %2429 = vpow2.f32 %v1494_v38 }
 0x726   :  { %v2428_v42 = vpop.eup %2427 }
 0x727   :  { %v1262_v43 = vadd.f32 1.0, %v2428_v42  ;;  %v2430_v47 = vpop.eup %2429 }
 0x728   :  { %v1272_v51 = vadd.f32 1.0, %v2430_v47 }
 0x729   :  { %2431 = vrcp.f32 %v1262_v43 }
 0x72a   :  { %2433 = vrcp.f32 %v1272_v51 }
 0x733   :  { %v2432_v60 = vpop.eup %2431 }
 0x734   :  { %v1275_v61 = vmul.f32 %v2432_v60, %v1255_v52  ;;  %v2434_v6 = vpop.eup %2433 }
 0x735   :  { %v1280_v7 = vsub.f32 1.0, %v2434_v6  ;;  %v1282_v63 = vmul.f32 %v2434_v6, %v3017_v62 }
 0x736   :  { %v1278_v0 = vadd.f32 %v1276_v56, %v1275_v61 }
 0x738   :  { %2435 = vtanh.f32 %v1278_v0 }
 0x742   :  { %v2436_v13 = vpop.eup %2435 }
 0x743   :  { %v1281_v18 = vmul.f32 %v2436_v13, %v1280_v7 }
 0x745   :  { %v1283_v1 = vadd.f32 %v1282_v63, %v1281_v18 }
 0x747   :  { %1495 = vst [vmem:[%s3084_s4 + $0xc] sm:$0x3] %v1283_v1  ;;  %1353 = vmatmul.mubr.f32.vlgmr.msra.gmra.mrb[14].mxu0 %v1283_v1  ;;  %1914 = vmatmul.mubr.f32.vlgmr.msra.gmra.mrb[14].mxu1 %v1283_v1 }
 0x81a   :  { %v1354_v8 = vpop.f32.mrb[14].mxu0  ;;  %v1425_v11 = vpop.f32.mrb[14].mxu1 }
 0x81b   :  { %v1355_v14 = vadd.f32 %v1354_v8, %v2754_v26  ;;  %v1356_v12 = vpop.f32.mrb[15].mxu0  ;;  %v1915_v17 = vpop.f32.mrb[15].mxu1  ;;  %v1426_v36 = vadd.f32 %v1425_v11, %v2763_v50 }
 0x81c   :  { %v1357_v19 = vadd.f32 %v1356_v12, %v2756_v27 }
 0x81d   :  { %v1429_v23 = vadd.f32 %v1496_v2, %v1355_v14 }
 0x81e   :  { %v1439_v25 = vadd.f32 %v1437_v20, %v1357_v19 }
 0x81f   :  { %v1497_v24 = vmul.f32 -1.442695, %v1429_v23 }
 0x820   :  { %v1498_v28 = vmul.f32 -1.442695, %v1439_v25 }
 0x821   :  { %2437 = vpow2.f32 %v1497_v24 }
 0x822   :  { %2439 = vpow2.f32 %v1498_v28 }
 0x82b   :  { %v2438_v30 = vpop.eup %2437 }
 0x82c   :  { %v1433_v31 = vadd.f32 1.0, %v2438_v30  ;;  %v2440_v33 = vpop.eup %2439 }
 0x82d   :  { %v1443_v35 = vadd.f32 1.0, %v2440_v33 }
 0x82e   :  { %2441 = vrcp.f32 %v1433_v31 }
 0x82f   :  { %2443 = vrcp.f32 %v1443_v35 }
 0x838   :  { %v2442_v26 = vpop.eup %2441 }
 0x839   :  { %v1446_v5 = vmul.f32 %v2442_v26, %v1426_v36  ;;  %v2444_v27 = vpop.eup %2443 }
 0x83a   :  { %v1451_v40 = vsub.f32 1.0, %v2444_v27  ;;  %v1453_v45 = vmul.f32 %v2444_v27, %v1283_v1 }
 0x83b   :  { %v1449_v39 = vadd.f32 %v1447_v37, %v1446_v5 }
 0x83d   :  { %2445 = vtanh.f32 %v1449_v39 }
 0x847   :  { %v2446_v41 = vpop.eup %2445 }
 0x848   :  { %v1452_v44 = vmul.f32 %v2446_v41, %v1451_v40 }
 0x84a   :  { %v1454_v46 = vadd.f32 %v1453_v45, %v1452_v44 }
 0x84c   :  { %1499 = vst [vmem:[%s3084_s4 + $0xe] sm:$0x3] %v1454_v46  ;;  %1457 = vst [vmem:[#allocation2] sm:$0x3] %v1454_v46 }
 0x84d   :  { %1461 = vst [vmem:[%s3085_s5] sm:$0x3] %v1454_v46 }

</bundles_post_ra>
